<compile_context>
chip_gen: v5e
topology: v5e:2x2
jax: 0.10.0
libtpu: 0.0.40
codegen_flags: <defaults>
</compile_context>

<pallas_src>
import jax
import jax.numpy as jnp
from jax.experimental import pallas as pl
from jax.experimental.pallas import tpu as pltpu


# ----------------------------------------------------------------------------
# Kernel
# ----------------------------------------------------------------------------
def _gru_cell_kernel(g_ref, x_ref, st_ref, s_ref,
                     wgx_ref, wgs_ref, bg_ref, wux_ref, wus_ref, bu_ref,
                     h_ref):
    KN, N = g_ref.shape                      # K*N, N
    K = KN // N
    TB, _, H = s_ref.shape                   # batch tile, N, hidden
    C = x_ref.shape[-1] // TB                # input feature dim
    mdt = g_ref.dtype                        # matmul input dtype (bf16 or f32)

    Gm = g_ref[...]                          # [K*N, N]       (already mdt)
    xT = x_ref[0]                            # [N, TB*C]  f32 (node-major)
    sT = st_ref[0]                           # [N, TB*H]  f32 (node-major)
    s_bm = s_ref[...].reshape(TB * N, H)     # [TB*N, H]  f32 (batch-major)

    # ---- G stage: node-major, batch folded into lanes; x part computed once ----
    Tx = jnp.dot(Gm, xT.astype(mdt), preferred_element_type=jnp.float32)  # [K*N, TB*C]
    Ts = jnp.dot(Gm, sT.astype(mdt), preferred_element_type=jnp.float32)  # [K*N, TB*H]

    def to_batch_major(T, F):
        # [K*N, TB*F] rows (k, i), cols (b, f)  ->  [TB*N, K*F] rows (b, i), cols (k, f)
        rows = []
        for b in range(TB):
            blocks = [T[k * N:(k + 1) * N, b * F:(b + 1) * F] for k in range(K)]
            rows.append(blocks[0] if K == 1 else jnp.concatenate(blocks, axis=-1))
        return rows[0] if TB == 1 else jnp.concatenate(rows, axis=0)

    Txr = to_batch_major(Tx, C).astype(mdt)   # [TB*N, K*C]  (reused by both passes)
    Tsr = to_batch_major(Ts, H).astype(mdt)   # [TB*N, K*H]

    # ---- gate pass: sigmoid(GCN([x | state])) ----
    gate_pre = (jnp.dot(Txr, wgx_ref[...], preferred_element_type=jnp.float32)
                + jnp.dot(Tsr, wgs_ref[...], preferred_element_type=jnp.float32)
                + bg_ref[...])                                   # [TB*N, 2H] f32
    gate = jax.nn.sigmoid(gate_pre)
    z = gate[:, :H]                                              # [TB*N, H]
    r = gate[:, H:]                                              # [TB*N, H]

    # ---- candidate pass: tanh(GCN([x | r*state])), x-support reused via Txr ----
    rs = r * s_bm                                                # [TB*N, H] f32
    if TB == 1:
        rsT = rs                                                 # [N, H]
    else:
        rsT = jnp.concatenate([rs[b * N:(b + 1) * N, :] for b in range(TB)],
                              axis=-1)                           # [N, TB*H]
    Trs = jnp.dot(Gm, rsT.astype(mdt), preferred_element_type=jnp.float32)  # [K*N, TB*H]
    Trsr = to_batch_major(Trs, H).astype(mdt)                    # [TB*N, K*H]

    upd_pre = (jnp.dot(Txr, wux_ref[...], preferred_element_type=jnp.float32)
               + jnp.dot(Trsr, wus_ref[...], preferred_element_type=jnp.float32)
               + bu_ref[...])                                    # [TB*N, H] f32
    hc = jnp.tanh(upd_pre)

    # ---- GRU blend (f32) ----
    h = (1.0 - z) * s_bm + z * hc                                # [TB*N, H]
    h_ref[...] = h.reshape(TB, N, H).astype(h_ref.dtype)


# ----------------------------------------------------------------------------
# Sizing helpers (generation-aware)
# ----------------------------------------------------------------------------
def _vmem_limit_bytes():
    cap = 64 * 1024 * 1024
    try:
        cap = int(pltpu.get_tpu_info().vmem_capacity_bytes)
    except Exception:
        pass
    # ~75% of physical VMEM, capped below 96 MiB; v7x (64 MiB) -> 48 MiB,
    # v5e/v6e (128 MiB) -> 96 MiB.
    return max(32 * 1024 * 1024, min(cap * 3 // 4, 96 * 1024 * 1024))


def _estimate_step_bytes(TB, N, C, H, K):
    inv = 2 * (K * N * N) + 2 * (K * (C + H) * 3 * H)                # bf16 G + weights (x1)
    tiles = 4 * 2 * (N * TB * C + 2 * N * TB * H + TB * N * H)       # double-buffered tiles
    temps = 4 * (2 * K * N * TB * (C + 2 * H) + 6 * TB * N * H)      # supports + gates
    return inv + tiles + temps


def _pick_batch_tile(B, N, C, H, K, budget):
    best = 1
    for t in range(1, B + 1):
        if B % t:
            continue
        if B > 1 and B // t < 2:        # keep >= 2 grid steps for 2-TC chips
            break
        if _estimate_step_bytes(t, N, C, H, K) > 0.6 * budget:
            break
        best = t
    return best


# ----------------------------------------------------------------------------
# Wrapper
# ----------------------------------------------------------------------------
def gru_cell_forward(G, x, state, W_gate, b_gate, W_upd, b_upd, *, K, dim_hidden,
                     matmul_dtype=jnp.bfloat16, batch_tile=None):
    """Pallas implementation of GRU_Cell.forward.

    G: [K, N, N], x: [B, N, C], state: [B, N, H] -> h: [B, N, H]
    W_gate: [K*(C+H), 2H], b_gate: [2H], W_upd: [K*(C+H), H], b_upd: [H]
    """
    B, N, C = x.shape
    H = dim_hidden
    P = C + H
    assert G.shape == (K, N, N)
    assert state.shape == (B, N, H)
    assert W_gate.shape == (K * P, 2 * H) and W_upd.shape == (K * P, H)

    vmem_limit = _vmem_limit_bytes()
    TB = _pick_batch_tile(B, N, C, H, K, vmem_limit) if batch_tile is None else batch_tile
    assert B % TB == 0, "batch tile must divide batch size"
    nsteps = B // TB
    f32 = jnp.float32

    # Grid-invariant operands: reshape / split / cast once outside the kernel.
    Gtall = G.reshape(K * N, N).astype(matmul_dtype)               # [K*N, N]
    Wg3 = W_gate.reshape(K, P, 2 * H)
    Wu3 = W_upd.reshape(K, P, H)
    Wgx = Wg3[:, :C, :].reshape(K * C, 2 * H).astype(matmul_dtype)  # x rows, k-major
    Wgs = Wg3[:, C:, :].reshape(K * H, 2 * H).astype(matmul_dtype)  # state rows
    Wux = Wu3[:, :C, :].reshape(K * C, H).astype(matmul_dtype)
    Wus = Wu3[:, C:, :].reshape(K * H, H).astype(matmul_dtype)
    bg2 = b_gate.reshape(1, 2 * H).astype(f32)
    bu2 = b_upd.reshape(1, H).astype(f32)

    # Node-major, batch-in-lanes feature layouts for the G-stage matmuls
    # (built by XLA outside the kernel; blocks keep their last two dims full).
    xT3 = (x.astype(f32).reshape(nsteps, TB, N, C)
           .transpose(0, 2, 1, 3).reshape(nsteps, N, TB * C))
    sT3 = (state.astype(f32).reshape(nsteps, TB, N, H)
           .transpose(0, 2, 1, 3).reshape(nsteps, N, TB * H))
    s_nat = state.astype(f32)                                      # batch-major copy

    def _call(single_buffer_invariants):
        kw = ({"pipeline_mode": pl.Buffered(1)}
              if single_buffer_invariants else {})
        in_specs = [
            pl.BlockSpec((K * N, N), lambda i: (0, 0), **kw),          # G (invariant)
            pl.BlockSpec((1, N, TB * C), lambda i: (i, 0, 0)),         # x  (node-major)
            pl.BlockSpec((1, N, TB * H), lambda i: (i, 0, 0)),         # s  (node-major)
            pl.BlockSpec((TB, N, H), lambda i: (i, 0, 0)),             # s  (batch-major)
            pl.BlockSpec((K * C, 2 * H), lambda i: (0, 0), **kw),      # W_gate (x rows)
            pl.BlockSpec((K * H, 2 * H), lambda i: (0, 0), **kw),      # W_gate (s rows)
            pl.BlockSpec((1, 2 * H), lambda i: (0, 0), **kw),          # b_gate
            pl.BlockSpec((K * C, H), lambda i: (0, 0), **kw),          # W_upd (x rows)
            pl.BlockSpec((K * H, H), lambda i: (0, 0), **kw),          # W_upd (s rows)
            pl.BlockSpec((1, H), lambda i: (0, 0), **kw),              # b_upd
        ]
        return pl.pallas_call(
            _gru_cell_kernel,
            out_shape=jax.ShapeDtypeStruct((B, N, H), x.dtype),
            grid=(nsteps,),
            in_specs=in_specs,
            out_specs=pl.BlockSpec((TB, N, H), lambda i: (i, 0, 0)),
            compiler_params=pltpu.CompilerParams(
                dimension_semantics=("parallel",),
                vmem_limit_bytes=vmem_limit,
            ),
        )(Gtall, xT3, sT3, s_nat, Wgx, Wgs, bg2, Wux, Wus, bu2)

    try:
        # Preferred: single-buffer the grid-invariant slabs (halves their VMEM).
        return _call(True)
    except Exception:
        # Fallback for JAX versions without pipeline_mode support on pallas_call.
        return _call(False)


# ----------------------------------------------------------------------------
# Demo / checks
# ----------------------------------------------------------------------------
if __name__ == "__main__":
    B, N, C, H, K = 2, 16, 4, 32, 3
    P = C + H

    key = jax.random.PRNGKey(0)
    kG, kx, ks, kwg, kwu = jax.random.split(key, 5)

    G = jax.random.normal(kG, (K, N, N), dtype=jnp.float32)
    x = jax.random.normal(kx, (B, N, C), dtype=jnp.float32)
    state = jax.random.normal(ks, (B, N, H), dtype=jnp.float32)

    def xavier_normal(k, shape):
        fan_in, fan_out = shape
        std = (2.0 / (fan_in + fan_out)) ** 0.5
        return std * jax.random.normal(k, shape, dtype=jnp.float32)

    W_gate = xavier_normal(kwg, (K * P, 2 * H))
    b_gate = jnp.zeros((2 * H,), dtype=jnp.float32)
    W_upd = xavier_normal(kwu, (K * P, H))
    b_upd = jnp.zeros((H,), dtype=jnp.float32)

    # --- pure-JAX reference mirroring the PyTorch forward exactly (f32) ---
    def gcn_ref(G_, feat, W, b):
        sup = jnp.concatenate(
            [jnp.einsum('ij,bjp->bip', G_[k], feat) for k in range(K)], axis=-1)
        return jnp.einsum('bip,pq->biq', sup, W) + b

    def gru_ref_f32(G_, x_, state_):
        combined = jnp.concatenate([x_, state_], axis=-1)
        cc = jax.nn.sigmoid(gcn_ref(G_, combined, W_gate, b_gate))
        z, r = cc[..., :H], cc[..., H:]
        cand = jnp.concatenate([x_, r * state_], axis=-1)
        hc = jnp.tanh(gcn_ref(G_, cand, W_upd, b_upd))
        return (1.0 - z) * state_ + z * hc

    # --- precision-matched reference (bf16 matmul inputs, f32 accumulation) ---
    def gcn_ref_cast(G_, feat, W3, b, dt):
        S = jnp.einsum('kij,bjp->kbip', G_.astype(dt), feat.astype(dt),
                       preferred_element_type=jnp.float32)
        out = jnp.einsum('kbip,kpq->biq', S.astype(dt), W3.astype(dt),
                         preferred_element_type=jnp.float32)
        return out + b

    def gru_ref_cast(G_, x_, state_, dt):
        Wg3 = W_gate.reshape(K, P, 2 * H)
        Wu3 = W_upd.reshape(K, P, H)
        combined = jnp.concatenate([x_, state_], axis=-1)
        cc = jax.nn.sigmoid(gcn_ref_cast(G_, combined, Wg3, b_gate, dt))
        z, r = cc[..., :H], cc[..., H:]
        cand = jnp.concatenate([x_, r * state_], axis=-1)
        hc = jnp.tanh(gcn_ref_cast(G_, cand, Wu3, b_upd, dt))
        return (1.0 - z) * state_ + z * hc

    # 1) exact-semantics check: f32 matmul mode vs the literal reference.
    h32 = gru_cell_forward(G, x, state, W_gate, b_gate, W_upd, b_upd,
                           K=K, dim_hidden=H, matmul_dtype=jnp.float32)
    h32 = jax.block_until_ready(h32)
    ref32 = gru_ref_f32(G, x, state)
    assert h32.shape == (B, N, H)
    assert jnp.allclose(h32, ref32, atol=2e-3, rtol=2e-3), \
        "f32 kernel mismatch vs reference"

    # 2) fast path (bf16 MXU inputs, f32 accumulation) vs precision-matched ref.
    hbf = gru_cell_forward(G, x, state, W_gate, b_gate, W_upd, b_upd,
                           K=K, dim_hidden=H, matmul_dtype=jnp.bfloat16)
    hbf = jax.block_until_ready(hbf)
    refbf = gru_ref_cast(G, x, state, jnp.bfloat16)
    assert hbf.shape == (B, N, H)
    assert jnp.allclose(hbf, refbf, atol=1e-2, rtol=1e-2), \
        "bf16 kernel mismatch vs precision-matched reference"

    print("KERNEL_OK")
</pallas_src>

<mosaic_0001>
module attributes {stable_mosaic.version = 11 : i64} {
  func.func @_gru_cell_kernel(%arg0: i32, %arg1: memref<48x16xf32, #tpu.memory_space<vmem>>, %arg2: memref<1x16x4xf32, #tpu.memory_space<vmem>>, %arg3: memref<1x16x32xf32, #tpu.memory_space<vmem>>, %arg4: memref<1x16x32xf32, #tpu.memory_space<vmem>>, %arg5: memref<12x64xf32, #tpu.memory_space<vmem>>, %arg6: memref<96x64xf32, #tpu.memory_space<vmem>>, %arg7: memref<1x64xf32, #tpu.memory_space<vmem>>, %arg8: memref<12x32xf32, #tpu.memory_space<vmem>>, %arg9: memref<96x32xf32, #tpu.memory_space<vmem>>, %arg10: memref<1x32xf32, #tpu.memory_space<vmem>>, %arg11: memref<1x16x32xf32, #tpu.memory_space<vmem>>) attributes {dimension_semantics = [#tpu.dimension_semantics<parallel>], iteration_bounds = array<i64: 2>, scalar_prefetch = 0 : i64, scratch_operands = 0 : i64, tpu.core_type = #tpu.core_type<tc>, window_params = [{pipeline_mode = #tpu.pipeline_mode<synchronous>, transform_indices = @transform_0, window_bounds = array<i64: 48, 16>}, {transform_indices = @transform_1, window_bounds = array<i64: 1, 16, 4>}, {transform_indices = @transform_2, window_bounds = array<i64: 1, 16, 32>}, {transform_indices = @transform_3, window_bounds = array<i64: 1, 16, 32>}, {pipeline_mode = #tpu.pipeline_mode<synchronous>, transform_indices = @transform_4, window_bounds = array<i64: 12, 64>}, {pipeline_mode = #tpu.pipeline_mode<synchronous>, transform_indices = @transform_5, window_bounds = array<i64: 96, 64>}, {pipeline_mode = #tpu.pipeline_mode<synchronous>, transform_indices = @transform_6, window_bounds = array<i64: 1, 64>}, {pipeline_mode = #tpu.pipeline_mode<synchronous>, transform_indices = @transform_7, window_bounds = array<i64: 12, 32>}, {pipeline_mode = #tpu.pipeline_mode<synchronous>, transform_indices = @transform_8, window_bounds = array<i64: 96, 32>}, {pipeline_mode = #tpu.pipeline_mode<synchronous>, transform_indices = @transform_9, window_bounds = array<i64: 1, 32>}, {transform_indices = @transform_10, window_bounds = array<i64: 1, 16, 32>}]} {
    %c0 = arith.constant 0 : index
    %c0_0 = arith.constant 0 : index
    %0 = vector.load %arg1[%c0, %c0_0] : memref<48x16xf32, #tpu.memory_space<vmem>>, vector<48x16xf32>
    %c0_1 = arith.constant 0 : index
    %c0_2 = arith.constant 0 : index
    %c0_3 = arith.constant 0 : index
    %1 = vector.load %arg2[%c0_1, %c0_2, %c0_3] : memref<1x16x4xf32, #tpu.memory_space<vmem>>, vector<1x16x4xf32>
    %2 = vector.shape_cast %1 : vector<1x16x4xf32> to vector<16x4xf32>
    %c0_4 = arith.constant 0 : index
    %c0_5 = arith.constant 0 : index
    %c0_6 = arith.constant 0 : index
    %3 = vector.load %arg3[%c0_4, %c0_5, %c0_6] : memref<1x16x32xf32, #tpu.memory_space<vmem>>, vector<1x16x32xf32>
    %4 = vector.shape_cast %3 : vector<1x16x32xf32> to vector<16x32xf32>
    %c0_7 = arith.constant 0 : index
    %c0_8 = arith.constant 0 : index
    %c0_9 = arith.constant 0 : index
    %5 = vector.load %arg4[%c0_7, %c0_8, %c0_9] : memref<1x16x32xf32, #tpu.memory_space<vmem>>, vector<1x16x32xf32>
    %6 = vector.shape_cast %5 : vector<1x16x32xf32> to vector<16x32xf32>
    %cst = arith.constant dense<0.000000e+00> : vector<48x4xf32>
    %7 = tpu.matmul %0, %2, %cst {dimension_numbers = #tpu.dot_dimension_numbers<[1], [0], [0], [1], [0, 0, 1, 1], [], []>} : vector<48x16xf32>, vector<16x4xf32>, vector<48x4xf32> -> vector<48x4xf32>
    %cst_10 = arith.constant dense<0.000000e+00> : vector<48x32xf32>
    %8 = tpu.matmul %0, %4, %cst_10 {dimension_numbers = #tpu.dot_dimension_numbers<[1], [0], [0], [1], [0, 0, 1, 1], [], []>} : vector<48x16xf32>, vector<16x32xf32>, vector<48x32xf32> -> vector<48x32xf32>
    %9 = vector.extract_strided_slice %7 {offsets = [0, 0], sizes = [16, 4], strides = [1, 1]} : vector<48x4xf32> to vector<16x4xf32>
    %10 = vector.extract_strided_slice %7 {offsets = [16, 0], sizes = [16, 4], strides = [1, 1]} : vector<48x4xf32> to vector<16x4xf32>
    %11 = vector.extract_strided_slice %7 {offsets = [32, 0], sizes = [16, 4], strides = [1, 1]} : vector<48x4xf32> to vector<16x4xf32>
    %12 = tpu.concatenate %9, %10, %11 in 1 : vector<16x4xf32>, vector<16x4xf32>, vector<16x4xf32> -> vector<16x12xf32>
    %13 = vector.extract_strided_slice %8 {offsets = [0, 0], sizes = [16, 32], strides = [1, 1]} : vector<48x32xf32> to vector<16x32xf32>
    %14 = vector.extract_strided_slice %8 {offsets = [16, 0], sizes = [16, 32], strides = [1, 1]} : vector<48x32xf32> to vector<16x32xf32>
    %15 = vector.extract_strided_slice %8 {offsets = [32, 0], sizes = [16, 32], strides = [1, 1]} : vector<48x32xf32> to vector<16x32xf32>
    %16 = tpu.concatenate %13, %14, %15 in 1 : vector<16x32xf32>, vector<16x32xf32>, vector<16x32xf32> -> vector<16x96xf32>
    %c0_11 = arith.constant 0 : index
    %c0_12 = arith.constant 0 : index
    %17 = vector.load %arg5[%c0_11, %c0_12] : memref<12x64xf32, #tpu.memory_space<vmem>>, vector<12x64xf32>
    %cst_13 = arith.constant dense<0.000000e+00> : vector<16x64xf32>
    %18 = tpu.matmul %12, %17, %cst_13 {dimension_numbers = #tpu.dot_dimension_numbers<[1], [0], [0], [1], [0, 0, 1, 1], [], []>} : vector<16x12xf32>, vector<12x64xf32>, vector<16x64xf32> -> vector<16x64xf32>
    %c0_14 = arith.constant 0 : index
    %c0_15 = arith.constant 0 : index
    %19 = vector.load %arg6[%c0_14, %c0_15] : memref<96x64xf32, #tpu.memory_space<vmem>>, vector<96x64xf32>
    %cst_16 = arith.constant dense<0.000000e+00> : vector<16x64xf32>
    %20 = tpu.matmul %16, %19, %cst_16 {dimension_numbers = #tpu.dot_dimension_numbers<[1], [0], [0], [1], [0, 0, 1, 1], [], []>} : vector<16x96xf32>, vector<96x64xf32>, vector<16x64xf32> -> vector<16x64xf32>
    %21 = arith.addf %18, %20 : vector<16x64xf32>
    %c0_17 = arith.constant 0 : index
    %c0_18 = arith.constant 0 : index
    %22 = vector.load %arg7[%c0_17, %c0_18] : memref<1x64xf32, #tpu.memory_space<vmem>>, vector<1x64xf32>
    %23 = vector.broadcast %22 : vector<1x64xf32> to vector<16x64xf32>
    %24 = arith.addf %21, %23 : vector<16x64xf32>
    %25 = arith.negf %24 : vector<16x64xf32>
    %26 = math.exp %25 : vector<16x64xf32>
    %cst_19 = arith.constant 1.000000e+00 : f32
    %27 = vector.broadcast %cst_19 : f32 to vector<16x64xf32>
    %28 = arith.addf %27, %26 : vector<16x64xf32>
    %29 = arith.divf %27, %28 : vector<16x64xf32>
    %30 = vector.extract_strided_slice %29 {offsets = [0, 0], sizes = [16, 32], strides = [1, 1]} : vector<16x64xf32> to vector<16x32xf32>
    %31 = vector.extract_strided_slice %29 {offsets = [0, 32], sizes = [16, 32], strides = [1, 1]} : vector<16x64xf32> to vector<16x32xf32>
    %32 = arith.mulf %31, %6 : vector<16x32xf32>
    %cst_20 = arith.constant dense<0.000000e+00> : vector<48x32xf32>
    %33 = tpu.matmul %0, %32, %cst_20 {dimension_numbers = #tpu.dot_dimension_numbers<[1], [0], [0], [1], [0, 0, 1, 1], [], []>} : vector<48x16xf32>, vector<16x32xf32>, vector<48x32xf32> -> vector<48x32xf32>
    %34 = vector.extract_strided_slice %33 {offsets = [0, 0], sizes = [16, 32], strides = [1, 1]} : vector<48x32xf32> to vector<16x32xf32>
    %35 = vector.extract_strided_slice %33 {offsets = [16, 0], sizes = [16, 32], strides = [1, 1]} : vector<48x32xf32> to vector<16x32xf32>
    %36 = vector.extract_strided_slice %33 {offsets = [32, 0], sizes = [16, 32], strides = [1, 1]} : vector<48x32xf32> to vector<16x32xf32>
    %37 = tpu.concatenate %34, %35, %36 in 1 : vector<16x32xf32>, vector<16x32xf32>, vector<16x32xf32> -> vector<16x96xf32>
    %c0_21 = arith.constant 0 : index
    %c0_22 = arith.constant 0 : index
    %38 = vector.load %arg8[%c0_21, %c0_22] : memref<12x32xf32, #tpu.memory_space<vmem>>, vector<12x32xf32>
    %cst_23 = arith.constant dense<0.000000e+00> : vector<16x32xf32>
    %39 = tpu.matmul %12, %38, %cst_23 {dimension_numbers = #tpu.dot_dimension_numbers<[1], [0], [0], [1], [0, 0, 1, 1], [], []>} : vector<16x12xf32>, vector<12x32xf32>, vector<16x32xf32> -> vector<16x32xf32>
    %c0_24 = arith.constant 0 : index
    %c0_25 = arith.constant 0 : index
    %40 = vector.load %arg9[%c0_24, %c0_25] : memref<96x32xf32, #tpu.memory_space<vmem>>, vector<96x32xf32>
    %cst_26 = arith.constant dense<0.000000e+00> : vector<16x32xf32>
    %41 = tpu.matmul %37, %40, %cst_26 {dimension_numbers = #tpu.dot_dimension_numbers<[1], [0], [0], [1], [0, 0, 1, 1], [], []>} : vector<16x96xf32>, vector<96x32xf32>, vector<16x32xf32> -> vector<16x32xf32>
    %42 = arith.addf %39, %41 : vector<16x32xf32>
    %c0_27 = arith.constant 0 : index
    %c0_28 = arith.constant 0 : index
    %43 = vector.load %arg10[%c0_27, %c0_28] : memref<1x32xf32, #tpu.memory_space<vmem>>, vector<1x32xf32>
    %44 = vector.broadcast %43 : vector<1x32xf32> to vector<16x32xf32>
    %45 = arith.addf %42, %44 : vector<16x32xf32>
    %46 = math.tanh %45 : vector<16x32xf32>
    %cst_29 = arith.constant 1.000000e+00 : f32
    %47 = vector.broadcast %cst_29 : f32 to vector<16x32xf32>
    %48 = arith.subf %47, %30 : vector<16x32xf32>
    %49 = arith.mulf %48, %6 : vector<16x32xf32>
    %50 = arith.mulf %30, %46 : vector<16x32xf32>
    %51 = arith.addf %49, %50 : vector<16x32xf32>
    %52 = vector.shape_cast %51 : vector<16x32xf32> to vector<1x16x32xf32>
    %c0_30 = arith.constant 0 : index
    %c0_31 = arith.constant 0 : index
    %c0_32 = arith.constant 0 : index
    %53 = vector.load %arg11[%c0_30, %c0_31, %c0_32] : memref<1x16x32xf32, #tpu.memory_space<vmem>>, vector<1x16x32xf32>
    tpu.vector_store %arg11[%c0_30, %c0_31, %c0_32], %52 {strides = array<i32>} : memref<1x16x32xf32, #tpu.memory_space<vmem>>, vector<1x16x32xf32>,
    return
  }
  func.func @transform_0(%arg0: i32) -> (i32, i32) {
    %c0_i32 = arith.constant 0 : i32
    %c0_i32_0 = arith.constant 0 : i32
    %c0_i32_1 = arith.constant 0 : i32
    return %c0_i32, %c0_i32_0 : i32, i32
  }
  func.func @transform_1(%arg0: i32) -> (i32, i32, i32) {
    %c0_i32 = arith.constant 0 : i32
    %c0_i32_0 = arith.constant 0 : i32
    %c0_i32_1 = arith.constant 0 : i32
    return %arg0, %c0_i32, %c0_i32_0 : i32, i32, i32
  }
  func.func @transform_2(%arg0: i32) -> (i32, i32, i32) {
    %c0_i32 = arith.constant 0 : i32
    %c0_i32_0 = arith.constant 0 : i32
    %c0_i32_1 = arith.constant 0 : i32
    return %arg0, %c0_i32, %c0_i32_0 : i32, i32, i32
  }
  func.func @transform_3(%arg0: i32) -> (i32, i32, i32) {
    %c0_i32 = arith.constant 0 : i32
    %c0_i32_0 = arith.constant 0 : i32
    %c0_i32_1 = arith.constant 0 : i32
    return %arg0, %c0_i32, %c0_i32_0 : i32, i32, i32
  }
  func.func @transform_4(%arg0: i32) -> (i32, i32) {
    %c0_i32 = arith.constant 0 : i32
    %c0_i32_0 = arith.constant 0 : i32
    %c0_i32_1 = arith.constant 0 : i32
    return %c0_i32, %c0_i32_0 : i32, i32
  }
  func.func @transform_5(%arg0: i32) -> (i32, i32) {
    %c0_i32 = arith.constant 0 : i32
    %c0_i32_0 = arith.constant 0 : i32
    %c0_i32_1 = arith.constant 0 : i32
    return %c0_i32, %c0_i32_0 : i32, i32
  }
  func.func @transform_6(%arg0: i32) -> (i32, i32) {
    %c0_i32 = arith.constant 0 : i32
    %c0_i32_0 = arith.constant 0 : i32
    %c0_i32_1 = arith.constant 0 : i32
    return %c0_i32, %c0_i32_0 : i32, i32
  }
  func.func @transform_7(%arg0: i32) -> (i32, i32) {
    %c0_i32 = arith.constant 0 : i32
    %c0_i32_0 = arith.constant 0 : i32
    %c0_i32_1 = arith.constant 0 : i32
    return %c0_i32, %c0_i32_0 : i32, i32
  }
  func.func @transform_8(%arg0: i32) -> (i32, i32) {
    %c0_i32 = arith.constant 0 : i32
    %c0_i32_0 = arith.constant 0 : i32
    %c0_i32_1 = arith.constant 0 : i32
    return %c0_i32, %c0_i32_0 : i32, i32
  }
  func.func @transform_9(%arg0: i32) -> (i32, i32) {
    %c0_i32 = arith.constant 0 : i32
    %c0_i32_0 = arith.constant 0 : i32
    %c0_i32_1 = arith.constant 0 : i32
    return %c0_i32, %c0_i32_0 : i32, i32
  }
  func.func @transform_10(%arg0: i32) -> (i32, i32, i32) {
    %c0_i32 = arith.constant 0 : i32
    %c0_i32_0 = arith.constant 0 : i32
    %c0_i32_1 = arith.constant 0 : i32
    return %arg0, %c0_i32, %c0_i32_0 : i32, i32, i32
  }
}

module attributes {stable_mosaic.version = 11 : i64} {
  func.func @_gru_cell_kernel(%arg0: i32, %arg1: memref<48x16xf32, #tpu.memory_space<vmem>>, %arg2: memref<1x16x4xf32, #tpu.memory_space<vmem>>, %arg3: memref<1x16x32xf32, #tpu.memory_space<vmem>>, %arg4: memref<1x16x32xf32, #tpu.memory_space<vmem>>, %arg5: memref<12x64xf32, #tpu.memory_space<vmem>>, %arg6: memref<96x64xf32, #tpu.memory_space<vmem>>, %arg7: memref<1x64xf32, #tpu.memory_space<vmem>>, %arg8: memref<12x32xf32, #tpu.memory_space<vmem>>, %arg9: memref<96x32xf32, #tpu.memory_space<vmem>>, %arg10: memref<1x32xf32, #tpu.memory_space<vmem>>, %arg11: memref<1x16x32xf32, #tpu.memory_space<vmem>>) attributes {dimension_semantics = [#tpu.dimension_semantics<parallel>], iteration_bounds = array<i64: 2>, scalar_prefetch = 0 : i64, scratch_operands = 0 : i64, tpu.core_type = #tpu.core_type<tc>, window_params = [{pipeline_mode = #tpu.pipeline_mode<synchronous>, transform_indices = @transform_0, window_bounds = array<i64: 48, 16>}, {transform_indices = @transform_1, window_bounds = array<i64: 1, 16, 4>}, {transform_indices = @transform_2, window_bounds = array<i64: 1, 16, 32>}, {transform_indices = @transform_3, window_bounds = array<i64: 1, 16, 32>}, {pipeline_mode = #tpu.pipeline_mode<synchronous>, transform_indices = @transform_4, window_bounds = array<i64: 12, 64>}, {pipeline_mode = #tpu.pipeline_mode<synchronous>, transform_indices = @transform_5, window_bounds = array<i64: 96, 64>}, {pipeline_mode = #tpu.pipeline_mode<synchronous>, transform_indices = @transform_6, window_bounds = array<i64: 1, 64>}, {pipeline_mode = #tpu.pipeline_mode<synchronous>, transform_indices = @transform_7, window_bounds = array<i64: 12, 32>}, {pipeline_mode = #tpu.pipeline_mode<synchronous>, transform_indices = @transform_8, window_bounds = array<i64: 96, 32>}, {pipeline_mode = #tpu.pipeline_mode<synchronous>, transform_indices = @transform_9, window_bounds = array<i64: 1, 32>}, {transform_indices = @transform_10, window_bounds = array<i64: 1, 16, 32>}]} {
    %c0 = arith.constant 0 : index
    %c0_0 = arith.constant 0 : index
    %0 = vector.load %arg1[%c0, %c0_0] : memref<48x16xf32, #tpu.memory_space<vmem>>, vector<48x16xf32>
    %c0_1 = arith.constant 0 : index
    %c0_2 = arith.constant 0 : index
    %c0_3 = arith.constant 0 : index
    %1 = vector.load %arg2[%c0_1, %c0_2, %c0_3] : memref<1x16x4xf32, #tpu.memory_space<vmem>>, vector<1x16x4xf32>
    %2 = vector.shape_cast %1 : vector<1x16x4xf32> to vector<16x4xf32>
    %c0_4 = arith.constant 0 : index
    %c0_5 = arith.constant 0 : index
    %c0_6 = arith.constant 0 : index
    %3 = vector.load %arg3[%c0_4, %c0_5, %c0_6] : memref<1x16x32xf32, #tpu.memory_space<vmem>>, vector<1x16x32xf32>
    %4 = vector.shape_cast %3 : vector<1x16x32xf32> to vector<16x32xf32>
    %c0_7 = arith.constant 0 : index
    %c0_8 = arith.constant 0 : index
    %c0_9 = arith.constant 0 : index
    %5 = vector.load %arg4[%c0_7, %c0_8, %c0_9] : memref<1x16x32xf32, #tpu.memory_space<vmem>>, vector<1x16x32xf32>
    %6 = vector.shape_cast %5 : vector<1x16x32xf32> to vector<16x32xf32>
    %cst = arith.constant dense<0.000000e+00> : vector<48x4xf32>
    %7 = tpu.matmul %0, %2, %cst {dimension_numbers = #tpu.dot_dimension_numbers<[1], [0], [0], [1], [0, 0, 1, 1], [], []>} : vector<48x16xf32>, vector<16x4xf32>, vector<48x4xf32> -> vector<48x4xf32>
    %cst_10 = arith.constant dense<0.000000e+00> : vector<48x32xf32>
    %8 = tpu.matmul %0, %4, %cst_10 {dimension_numbers = #tpu.dot_dimension_numbers<[1], [0], [0], [1], [0, 0, 1, 1], [], []>} : vector<48x16xf32>, vector<16x32xf32>, vector<48x32xf32> -> vector<48x32xf32>
    %9 = vector.extract_strided_slice %7 {offsets = [0, 0], sizes = [16, 4], strides = [1, 1]} : vector<48x4xf32> to vector<16x4xf32>
    %10 = vector.extract_strided_slice %7 {offsets = [16, 0], sizes = [16, 4], strides = [1, 1]} : vector<48x4xf32> to vector<16x4xf32>
    %11 = vector.extract_strided_slice %7 {offsets = [32, 0], sizes = [16, 4], strides = [1, 1]} : vector<48x4xf32> to vector<16x4xf32>
    %12 = tpu.concatenate %9, %10, %11 in 1 : vector<16x4xf32>, vector<16x4xf32>, vector<16x4xf32> -> vector<16x12xf32>
    %13 = vector.extract_strided_slice %8 {offsets = [0, 0], sizes = [16, 32], strides = [1, 1]} : vector<48x32xf32> to vector<16x32xf32>
    %14 = vector.extract_strided_slice %8 {offsets = [16, 0], sizes = [16, 32], strides = [1, 1]} : vector<48x32xf32> to vector<16x32xf32>
    %15 = vector.extract_strided_slice %8 {offsets = [32, 0], sizes = [16, 32], strides = [1, 1]} : vector<48x32xf32> to vector<16x32xf32>
    %16 = tpu.concatenate %13, %14, %15 in 1 : vector<16x32xf32>, vector<16x32xf32>, vector<16x32xf32> -> vector<16x96xf32>
    %c0_11 = arith.constant 0 : index
    %c0_12 = arith.constant 0 : index
    %17 = vector.load %arg5[%c0_11, %c0_12] : memref<12x64xf32, #tpu.memory_space<vmem>>, vector<12x64xf32>
    %cst_13 = arith.constant dense<0.000000e+00> : vector<16x64xf32>
    %18 = tpu.matmul %12, %17, %cst_13 {dimension_numbers = #tpu.dot_dimension_numbers<[1], [0], [0], [1], [0, 0, 1, 1], [], []>} : vector<16x12xf32>, vector<12x64xf32>, vector<16x64xf32> -> vector<16x64xf32>
    %c0_14 = arith.constant 0 : index
    %c0_15 = arith.constant 0 : index
    %19 = vector.load %arg6[%c0_14, %c0_15] : memref<96x64xf32, #tpu.memory_space<vmem>>, vector<96x64xf32>
    %cst_16 = arith.constant dense<0.000000e+00> : vector<16x64xf32>
    %20 = tpu.matmul %16, %19, %cst_16 {dimension_numbers = #tpu.dot_dimension_numbers<[1], [0], [0], [1], [0, 0, 1, 1], [], []>} : vector<16x96xf32>, vector<96x64xf32>, vector<16x64xf32> -> vector<16x64xf32>
    %21 = arith.addf %18, %20 : vector<16x64xf32>
    %c0_17 = arith.constant 0 : index
    %c0_18 = arith.constant 0 : index
    %22 = vector.load %arg7[%c0_17, %c0_18] : memref<1x64xf32, #tpu.memory_space<vmem>>, vector<1x64xf32>
    %23 = vector.broadcast %22 : vector<1x64xf32> to vector<16x64xf32>
    %24 = arith.addf %21, %23 : vector<16x64xf32>
    %25 = arith.negf %24 : vector<16x64xf32>
    %26 = math.exp %25 : vector<16x64xf32>
    %cst_19 = arith.constant 1.000000e+00 : f32
    %27 = vector.broadcast %cst_19 : f32 to vector<16x64xf32>
    %28 = arith.addf %27, %26 : vector<16x64xf32>
    %29 = arith.divf %27, %28 : vector<16x64xf32>
    %30 = vector.extract_strided_slice %29 {offsets = [0, 0], sizes = [16, 32], strides = [1, 1]} : vector<16x64xf32> to vector<16x32xf32>
    %31 = vector.extract_strided_slice %29 {offsets = [0, 32], sizes = [16, 32], strides = [1, 1]} : vector<16x64xf32> to vector<16x32xf32>
    %32 = arith.mulf %31, %6 : vector<16x32xf32>
    %cst_20 = arith.constant dense<0.000000e+00> : vector<48x32xf32>
    %33 = tpu.matmul %0, %32, %cst_20 {dimension_numbers = #tpu.dot_dimension_numbers<[1], [0], [0], [1], [0, 0, 1, 1], [], []>} : vector<48x16xf32>, vector<16x32xf32>, vector<48x32xf32> -> vector<48x32xf32>
    %34 = vector.extract_strided_slice %33 {offsets = [0, 0], sizes = [16, 32], strides = [1, 1]} : vector<48x32xf32> to vector<16x32xf32>
    %35 = vector.extract_strided_slice %33 {offsets = [16, 0], sizes = [16, 32], strides = [1, 1]} : vector<48x32xf32> to vector<16x32xf32>
    %36 = vector.extract_strided_slice %33 {offsets = [32, 0], sizes = [16, 32], strides = [1, 1]} : vector<48x32xf32> to vector<16x32xf32>
    %37 = tpu.concatenate %34, %35, %36 in 1 : vector<16x32xf32>, vector<16x32xf32>, vector<16x32xf32> -> vector<16x96xf32>
    %c0_21 = arith.constant 0 : index
    %c0_22 = arith.constant 0 : index
    %38 = vector.load %arg8[%c0_21, %c0_22] : memref<12x32xf32, #tpu.memory_space<vmem>>, vector<12x32xf32>
    %cst_23 = arith.constant dense<0.000000e+00> : vector<16x32xf32>
    %39 = tpu.matmul %12, %38, %cst_23 {dimension_numbers = #tpu.dot_dimension_numbers<[1], [0], [0], [1], [0, 0, 1, 1], [], []>} : vector<16x12xf32>, vector<12x32xf32>, vector<16x32xf32> -> vector<16x32xf32>
    %c0_24 = arith.constant 0 : index
    %c0_25 = arith.constant 0 : index
    %40 = vector.load %arg9[%c0_24, %c0_25] : memref<96x32xf32, #tpu.memory_space<vmem>>, vector<96x32xf32>
    %cst_26 = arith.constant dense<0.000000e+00> : vector<16x32xf32>
    %41 = tpu.matmul %37, %40, %cst_26 {dimension_numbers = #tpu.dot_dimension_numbers<[1], [0], [0], [1], [0, 0, 1, 1], [], []>} : vector<16x96xf32>, vector<96x32xf32>, vector<16x32xf32> -> vector<16x32xf32>
    %42 = arith.addf %39, %41 : vector<16x32xf32>
    %c0_27 = arith.constant 0 : index
    %c0_28 = arith.constant 0 : index
    %43 = vector.load %arg10[%c0_27, %c0_28] : memref<1x32xf32, #tpu.memory_space<vmem>>, vector<1x32xf32>
    %44 = vector.broadcast %43 : vector<1x32xf32> to vector<16x32xf32>
    %45 = arith.addf %42, %44 : vector<16x32xf32>
    %46 = math.tanh %45 : vector<16x32xf32>
    %cst_29 = arith.constant 1.000000e+00 : f32
    %47 = vector.broadcast %cst_29 : f32 to vector<16x32xf32>
    %48 = arith.subf %47, %30 : vector<16x32xf32>
    %49 = arith.mulf %48, %6 : vector<16x32xf32>
    %50 = arith.mulf %30, %46 : vector<16x32xf32>
    %51 = arith.addf %49, %50 : vector<16x32xf32>
    %52 = vector.shape_cast %51 : vector<16x32xf32> to vector<1x16x32xf32>
    %c0_30 = arith.constant 0 : index
    %c0_31 = arith.constant 0 : index
    %c0_32 = arith.constant 0 : index
    %53 = vector.load %arg11[%c0_30, %c0_31, %c0_32] : memref<1x16x32xf32, #tpu.memory_space<vmem>>, vector<1x16x32xf32>
    tpu.vector_store %arg11[%c0_30, %c0_31, %c0_32], %52 {strides = array<i32>} : memref<1x16x32xf32, #tpu.memory_space<vmem>>, vector<1x16x32xf32>,
    return
  }
  func.func @transform_0(%arg0: i32) -> (i32, i32) {
    %c0_i32 = arith.constant 0 : i32
    %c0_i32_0 = arith.constant 0 : i32
    %c0_i32_1 = arith.constant 0 : i32
    return %c0_i32, %c0_i32_0 : i32, i32
  }
  func.func @transform_1(%arg0: i32) -> (i32, i32, i32) {
    %c0_i32 = arith.constant 0 : i32
    %c0_i32_0 = arith.constant 0 : i32
    %c0_i32_1 = arith.constant 0 : i32
    return %arg0, %c0_i32, %c0_i32_0 : i32, i32, i32
  }
  func.func @transform_2(%arg0: i32) -> (i32, i32, i32) {
    %c0_i32 = arith.constant 0 : i32
    %c0_i32_0 = arith.constant 0 : i32
    %c0_i32_1 = arith.constant 0 : i32
    return %arg0, %c0_i32, %c0_i32_0 : i32, i32, i32
  }
  func.func @transform_3(%arg0: i32) -> (i32, i32, i32) {
    %c0_i32 = arith.constant 0 : i32
    %c0_i32_0 = arith.constant 0 : i32
    %c0_i32_1 = arith.constant 0 : i32
    return %arg0, %c0_i32, %c0_i32_0 : i32, i32, i32
  }
  func.func @transform_4(%arg0: i32) -> (i32, i32) {
    %c0_i32 = arith.constant 0 : i32
    %c0_i32_0 = arith.constant 0 : i32
    %c0_i32_1 = arith.constant 0 : i32
    return %c0_i32, %c0_i32_0 : i32, i32
  }
  func.func @transform_5(%arg0: i32) -> (i32, i32) {
    %c0_i32 = arith.constant 0 : i32
    %c0_i32_0 = arith.constant 0 : i32
    %c0_i32_1 = arith.constant 0 : i32
    return %c0_i32, %c0_i32_0 : i32, i32
  }
  func.func @transform_6(%arg0: i32) -> (i32, i32) {
    %c0_i32 = arith.constant 0 : i32
    %c0_i32_0 = arith.constant 0 : i32
    %c0_i32_1 = arith.constant 0 : i32
    return %c0_i32, %c0_i32_0 : i32, i32
  }
  func.func @transform_7(%arg0: i32) -> (i32, i32) {
    %c0_i32 = arith.constant 0 : i32
    %c0_i32_0 = arith.constant 0 : i32
    %c0_i32_1 = arith.constant 0 : i32
    return %c0_i32, %c0_i32_0 : i32, i32
  }
  func.func @transform_8(%arg0: i32) -> (i32, i32) {
    %c0_i32 = arith.constant 0 : i32
    %c0_i32_0 = arith.constant 0 : i32
    %c0_i32_1 = arith.constant 0 : i32
    return %c0_i32, %c0_i32_0 : i32, i32
  }
  func.func @transform_9(%arg0: i32) -> (i32, i32) {
    %c0_i32 = arith.constant 0 : i32
    %c0_i32_0 = arith.constant 0 : i32
    %c0_i32_1 = arith.constant 0 : i32
    return %c0_i32, %c0_i32_0 : i32, i32
  }
  func.func @transform_10(%arg0: i32) -> (i32, i32, i32) {
    %c0_i32 = arith.constant 0 : i32
    %c0_i32_0 = arith.constant 0 : i32
    %c0_i32_1 = arith.constant 0 : i32
    return %arg0, %c0_i32, %c0_i32_0 : i32, i32, i32
  }
}

</mosaic_0001>

<bundles_post_ra>
// kernel: tpu_custom_call.1
= control target key start
LH: loop header
LB: loop body
LE: loop exit
PB: predicated region body
PF: predicated region fallthrough
CT: control target
= control target key end

     0   :  { %15 = vsyncpa [#allocation3], 0  ;;  %s1483_s0 = inlined_call_operand.vmem [shape: f32[48,16], index: 0, kind: input, shape index: {}]   ;;  %s1484_s1 = inlined_call_operand.vmem [shape: f32[2,16,4], index: 1, kind: input, shape index: {}]   ;;  %s1485_s2 = inlined_call_operand.vmem [shape: f32[2,16,32], index: 2, kind: input, shape index: {}]   ;;  %s1486_s3 = inlined_call_operand.vmem [shape: f32[2,16,32], index: 3, kind: input, shape index: {}]   ;;  %s1487_s4 = inlined_call_operand.vmem [shape: f32[12,64], index: 4, kind: input, shape index: {}]   ;;  %s1488_s5 = inlined_call_operand.vmem [shape: f32[96,64], index: 5, kind: input, shape index: {}]   ;;  %s1489_s6 = inlined_call_operand.vmem [shape: f32[1,64], index: 6, kind: input, shape index: {}]   ;;  %s1490_s7 = inlined_call_operand.vmem [shape: f32[12,32], index: 7, kind: input, shape index: {}]   ;;  %s1491_s8 = inlined_call_operand.vmem [shape: f32[96,32], index: 8, kind: input, shape index: {}]   ;;  %s1492_s9 = inlined_call_operand.vmem [shape: f32[1,32], index: 9, kind: input, shape index: {}]   ;;  %s1493_s10 = inlined_call_operand.hbm [shape: f32[2,16,32], index: 10, kind: output, shape index: {}]  }
   0x1   :  { %17 = vsyncpa [#allocation3 + $0x1], 0  ;;  %s1168_s13 = smov 0   ;;  %s1170_s14 = smov 0  }
   0x2   :  { %s1172_s15 = smov 0   ;;  %s1174_s16 = smov 0  }
   0x3 LB: > { %s1189_s17 = sadd.s32 4294967295, %s1105_s16   ;;  %s927_s18 = sadd.s32 4294967294, %s1105_s16   ;;  %s1105_s16 = sphi %s1174_s16, %s1507_s16   ;;  %s1101_s15 = sphi %s1172_s15, %s1506_s15   ;;  %s1097_s14 = sphi %s1170_s14, %s1505_s14   ;;  %s1093_s13 = sphi %s1168_s13, %s1504_s13  }
   0x4   : > { %s1193_s19 = sadd.s32 1, %s1105_s16   ;;  %s255_s20 = sadd.s32 1, %s1101_s15 }
   0x5   : > { %s252_s21 = ssub.s32 %s1105_s16, %s1193_s19  ;;  %p265_p0 = scmp.ne.s32.totalorder %s1101_s15, %s1097_s14 }
   0x6   : > { %p253_p1 = scmp.eq.s32.totalorder %s252_s21, 0  ;;  %p266_p2 = scmp.eq.s32.totalorder %s1189_s17, 1 }
   0x7   : > { %p271_p3 = scmp.ne.s32.totalorder %s1097_s14, %s1093_s13  ;;  %p272_p4 = scmp.eq.s32.totalorder %s927_s18, 1 }
   0x8   : > { %s1204_s22 = scalar_select %p253_p1, %s1101_s15, %s255_s20  }
   0x9   : > { %p1206_p5 = por %p266_p2, %p265_p0  ;;  %p1210_p6 = por %p272_p4, %p271_p3 }
   0xa   : > { %p930_p7 = scmp.ge.s32.totalorder %s1105_s16, 1  ;;  %p335_p8 = scmp.lt.s32.totalorder %s1105_s16, 3 }
   0xc   : > { %p336_p9 = pnand %p930_p7, %p335_p8 }
   0xd   : > { %p383_p10 = scmp.lt.s32.totalorder (!%p336_p9), %s1189_s17, 1  ;;  %s1107_s21 = smov (!%p336_p9), 4  }
   0xe   : > { %339 = sbr.rel (%p336_p9) target bundleno = 1044 (0x414), region = 60  ;;  %s1494_s27 = smov (!%p336_p9), 8  }
   0xf   : > { %s1495_s28 = smov (!%p336_p9), 64   ;;  %s1501_s20 = smov (!%p336_p9), 32  }
  0x13   : > { %s384_s25 = scalar_select %p383_p10, %s1189_s17, 1  ;;  %v1231_v3 = vld [vmem:[%s1483_s0] sm:$0xff]  ;;  %vm410_vm0 = vcmask 130048   ;;  %v1240_v5 = vld [vmem:[%s1483_s0 + $0x8] sm:$0xff]  ;;  %v1249_v6 = vld [vmem:[%s1483_s0 + $0x10] sm:$0xff]  ;;  %vm594_vm1 = vcmask 1043456  }
  0x14   : > { %v1258_v7 = vld [vmem:[%s1483_s0 + $0x18] sm:$0xff]  ;;  %v1267_v8 = vld [vmem:[%s1483_s0 + $0x20] sm:$0xff]  ;;  %v1276_v9 = vld [vmem:[%s1483_s0 + $0x28] sm:$0xff]  ;;  %vm518_vm2 = vcmask 64512   ;;  %vm515_vm3 = vcmask 31744   ;;  %vm587_vm4 = vcmask 97280  }
  0x15   : > { %s1218_s26 = sshll.u32 %s384_s25, 4  ;;  %s1497_s25 = smov 32   ;;  %v556_v22 = vld [vmem:[%s1488_s5 + $0x58] sm:$0xff]  ;;  %v555_v23 = vld [vmem:[%s1488_s5 + $0x50] sm:$0xff]  ;;  %v554_v24 = vld [vmem:[%s1488_s5 + $0x48] sm:$0xff]  ;;  %vm540_vm5 = vcmask 523264  }
  0x16   : > { %s387_s29 = scalar_lea.vmem %s1484_s1, %s1218_s26  ;;  %s392_s12 = scalar_lea.vmem %s1485_s2, %s1218_s26  ;;  %568 = vmatpush.msra.mxu2 %v556_v22  ;;  %v553_v25 = vld [vmem:[%s1488_s5 + $0x40] sm:$0xff]  ;;  %v552_v26 = vld [vmem:[%s1488_s5 + $0x38] sm:$0xff]  ;;  %v551_v27 = vld [vmem:[%s1488_s5 + $0x30] sm:$0xff]  ;;  %vm537_vm6 = vcmask 261120   ;;  %vm557_vm7 = vcmask 785408  }
  0x17   : > { %v405_v0 = vld [vmem:[%s387_s29 + $0x8] sm:$0xff]  ;;  %v404_v1 = vld [vmem:[%s387_s29] sm:$0xff]  ;;  %v548_v34 = vld [vmem:[%s1488_s5 + $0x18] sm:$0xff]  ;;  %s397_s18 = scalar_lea.vmem %s1486_s3, %s1218_s26 }
  0x18   : > { %v407_v2 = vld [vmem:[%s392_s12 + $0x8] sm:$0xff]  ;;  %443 = vmatpush.msra.mxu0 %v405_v0  ;;  %v406_v4 = vld [vmem:[%s392_s12] sm:$0xff]  ;;  %569 = vmatpush.msra.mxu2 %v555_v23  ;;  %v547_v35 = vld [vmem:[%s1488_s5 + $0x10] sm:$0xff]  ;;  %s380_s12 = sand.u32 1, %s1097_s14  }
  0x19   : > { %478 = vmatpush.msra.mxu1 %v407_v2  ;;  %v544_v28 = vld [vmem:[%s1487_s4 + $0x8] sm:$0xf]  ;;  %v549_v31 = vld [vmem:[%s1488_s5 + $0x20] sm:$0xff] }
  0x1a   : > { %444 = vmatpush.msra.mxu0 %v404_v1  ;;  %570 = vmatpush.msra.mxu2 %v554_v24  ;;  %v739_v29 = vld [vmem:[%s1490_s7 + $0x8] sm:$0xf]  ;;  %v543_v32 = vld [vmem:[%s1487_s4] sm:$0xff] }
  0x1b   : > { %479 = vmatpush.msra.mxu1 %v406_v4  ;;  %938 = vmatmul.msk.f32.vlgmr.msra.gmra.mxu0 %vm410_vm0, %v1231_v3  ;;  %v550_v30 = vld [vmem:[%s1488_s5 + $0x28] sm:$0xff]  ;;  %v738_v33 = vld [vmem:[%s1490_s7] sm:$0xff] }
  0x1c   : > { %944 = vmatmul.msk.f32.vlgmr.msra.gmra.mxu1 %vm410_vm0, %v1231_v3  ;;  %571 = vmatpush.msra.mxu2 %v553_v25  ;;  %v546_v36 = vld [vmem:[%s1488_s5 + $0x8] sm:$0xff]  ;;  %v545_v37 = vld [vmem:[%s1488_s5] sm:$0xff] }
  0x1d   : > { %952 = vmatpush.msk.msra.mxu3 %vm594_vm1, %v544_v28  ;;  %965 = vmatpush.msk.msrb.mxu0 %vm594_vm1, %v739_v29  ;;  %v1348_v38 = vld [vmem:[%s397_s18] sm:$0xff]  ;;  %v1350_v39 = vld [vmem:[%s397_s18 + $0x8] sm:$0xff]  ;;  %s931_s18 = sshll.u32 %s380_s12, 4 }
  0x1e   : > { %572 = vmatpush.msra.mxu2 %v552_v26  ;;  %977 = vmatpush.msk.msrb.mxu1 %vm594_vm1, %v739_v29  ;;  %v1029_v57 = vld [vmem:[%s1489_s6] ss:$0 sm:$0xff]  ;;  %s382_s26 = scalar_lea.vmem [#allocation2], %s931_s18 }
  0x1f   : > { %613 = vmatpush.msra.mxu3 %v543_v32  ;;  %799 = vmatpush.msrb.mxu0 %v738_v33 }
  0x20   : > { %573 = vmatpush.msra.mxu2 %v551_v27  ;;  %978 = vmatpush.msrb.mxu1 %v738_v33 }
  0x22   : > { %574 = vmatpush.msra.mxu2 %v550_v30 }
  0x23   : > { %939 = vmatmul.msk.f32.gmra.mxu0 %vm410_vm0, %v1240_v5 }
  0x24   : > { %945 = vmatmul.msk.f32.gmra.mxu1 %vm410_vm0, %v1240_v5  ;;  %575 = vmatpush.msra.mxu2 %v549_v31 }
  0x26   : > { %576 = vmatpush.msra.mxu2 %v548_v34 }
  0x28   : > { %577 = vmatpush.msra.mxu2 %v547_v35 }
  0x2a   : > { %578 = vmatpush.msra.mxu2 %v546_v36 }
  0x2b   : > { %940 = vmatmul.msk.f32.gmra.mxu0 %vm410_vm0, %v1249_v6 }
  0x2c   : > { %946 = vmatmul.msk.f32.gmra.mxu1 %vm410_vm0, %v1249_v6  ;;  %579 = vmatpush.msra.mxu2 %v545_v37 }
  0x33   : > { %941 = vmatmul.msk.f32.gmra.mxu0 %vm410_vm0, %v1258_v7 }
  0x34   : > { %947 = vmatmul.msk.f32.gmra.mxu1 %vm410_vm0, %v1258_v7 }
  0x3b   : > { %942 = vmatmul.msk.f32.gmra.mxu0 %vm410_vm0, %v1267_v8 }
  0x3c   : > { %948 = vmatmul.msk.f32.gmra.mxu1 %vm410_vm0, %v1267_v8 }
  0x43   : > { %943 = vmatmul.msk.f32.gmra.mxu0 %vm410_vm0, %v1276_v9 }
  0x44   : > { %949 = vmatmul.msk.f32.gmra.mxu1 %vm410_vm0, %v1276_v9 }
  0x98   : > { %v1282_v10 = vpop.f32.mrf.mxu0 }
  0x99   : > { %v1284_v11 = vpop.f32.mrf.mxu1 }
  0xa0   : > { %v1286_v12 = vpop.f32.mrf.mxu0 }
  0xa1   : > { %v1288_v13 = vpop.f32.mrf.mxu1 }
  0xa8   : > { %v452_v14 = vpop.f32.mrf.mxu0 }
  0xa9   : > { %v487_v15 = vpop.f32.mrf.mxu1  ;;  %501 = vrot.lane.b32.xlu0 %v452_v14, %s1107_s21 }
  0xb0   : > { %v455_v16 = vpop.f32.mrf.mxu0 }
  0xb1   : > { %523 = vrot.lane.b32.xlu0 %v487_v15, %s1497_s25  ;;  %503 = vrot.lane.b32.xlu2 %v455_v16, %s1107_s21  ;;  %v490_v17 = vpop.f32.mrf.mxu1  ;;  %s1111_s21 = smov 96  }
  0xb8   : > { %v458_v18 = vpop.f32.mrf.mxu0 }
  0xb9   : > { %525 = vrot.lane.b32.xlu2 %v490_v17, %s1497_s25  ;;  %509 = vrot.lane.b32.xlu1 %v458_v18, %s1494_s27  ;;  %v493_v19 = vpop.f32.mrf.mxu1  ;;  %s1502_s25 = smov 64  }
  0xc0   : > { %v461_v20 = vpop.f32.mrf.mxu0 }
  0xc1   : > { %531 = vrot.lane.b32.xlu1 %v493_v19, %s1495_s28  ;;  %511 = vrot.lane.b32.xlu0 %v461_v20, %s1494_s27  ;;  %v496_v21 = vpop.f32.mrf.mxu1  ;;  %s1063_s27 = scalar_lea.hbm %s1493_s10, 32 }
  0xc2   : > { %669 = vrot.lane.b32.xlu2 %v1350_v39, %s1501_s20 }
  0xc9   : > { %533 = vrot.lane.b32.xlu1 %v496_v21, %s1495_s28  ;;  %667 = vrot.lane.b32.xlu0 %v1348_v38, %s1501_s20  ;;  %s838_s28 = sshll.u32 %s382_s26, 4  ;;  %s839_s28 = int_to_ptr.vmem [resolvable:$true] %s838_s28 }
 0x10b   : > { %v504_v45 = vpop.permute.xlu2 %503 }
 0x10c   : > { %v517_v46 = vsel %vm515_vm3, %v1286_v12, %v504_v45 }
 0x113   : > { %v526_v52 = vpop.permute.xlu2 %525 }
 0x114   : > { %v539_v53 = vsel %vm537_vm6, %v1288_v13, %v526_v52  ;;  %v742_v52 = vld [vmem:[%s1491_s8 + $0x10] sm:$0xff] }
 0x11b   : > { %v502_v40 = vpop.permute.xlu0 %501 }
 0x11c   : > { %v516_v41 = vsel %vm515_vm3, %v1282_v10, %v502_v40  ;;  %v670_v31 = vpop.permute.xlu2 %669 }
 0x123   : > { %v524_v42 = vpop.permute.xlu0 %523 }
 0x124   : > { %v538_v47 = vsel %vm537_vm6, %v1284_v11, %v524_v42 }
 0x12b   : > { %v510_v43 = vpop.permute.xlu1 %509 }
 0x12c   : > { %v519_v44 = vsel %vm518_vm2, %v516_v41, %v510_v43 }
 0x12d   : > { %953 = vmatmul.msk.f32.vlgmr.msra.gmra.mxu3 %vm587_vm4, %v519_v44  ;;  %966 = vmatmul.msk.f32.vlgmr.msrb.gmra.mxu0 %vm587_vm4, %v519_v44 }
 0x133   : > { %v532_v48 = vpop.permute.xlu1 %531  ;;  %v512_v49 = vpop.permute.xlu0 %511 }
 0x134   : > { %v541_v50 = vsel %vm540_vm5, %v538_v47, %v532_v48  ;;  %v520_v51 = vsel %vm518_vm2, %v517_v46, %v512_v49  ;;  %v748_v46 = vld [vmem:[%s1491_s8 + $0x40] sm:$0xff]  ;;  %v747_v47 = vld [vmem:[%s1491_s8 + $0x38] sm:$0xff]  ;;  %v746_v48 = vld [vmem:[%s1491_s8 + $0x30] sm:$0xff] }
 0x135   : > { %950 = vmatmul.msk.f32.vlgmr.msra.gmra.mxu2 %vm557_vm7, %v541_v50  ;;  %954 = vmatmul.msk.f32.gmra.mxu3 %vm587_vm4, %v520_v51  ;;  %v745_v49 = vld [vmem:[%s1491_s8 + $0x28] sm:$0xff]  ;;  %v744_v50 = vld [vmem:[%s1491_s8 + $0x20] sm:$0xff] }
 0x136   : > { %967 = vmatmul.msk.f32.vlgmr.msrb.gmra.mxu1 %vm587_vm4, %v520_v51  ;;  %v743_v51 = vld [vmem:[%s1491_s8 + $0x18] sm:$0xff] }
 0x13b   : > { %v534_v54 = vpop.permute.xlu1 %533  ;;  %v668_v30 = vpop.permute.xlu0 %667 }
 0x13c   : > { %v542_v55 = vsel %vm540_vm5, %v539_v53, %v534_v54  ;;  %v741_v53 = vld [vmem:[%s1491_s8 + $0x8] sm:$0xff]  ;;  %v740_v54 = vld [vmem:[%s1491_s8] sm:$0xff] }
 0x13d   : > { %951 = vmatmul.msk.f32.gmra.mxu2 %vm557_vm7, %v542_v55 }
 0x1b0   : > { %v615_v56 = vpop.f32.mrf.mxu3 }
 0x1b8   : > { %v581_v58 = vpop.f32.mrf.mxu2  ;;  %v618_v62 = vpop.f32.mrf.mxu3 }
 0x1b9   : > { %v616_v59 = vadd.f32 %v615_v56, %v581_v58 }
 0x1bb   : > { %v625_v60 = vadd.f32 %v1029_v57, %v616_v59 }
 0x1bd   : > { %v955_v61 = vmul.f32 -1.442695, %v625_v60 }
 0x1bf   : > { %1031 = vpow2.f32 %v955_v61 }
 0x1c0   : > { %v584_v63 = vpop.f32.mrf.mxu2 }
 0x1c1   : > { %v619_v0 = vadd.f32 %v618_v62, %v584_v63  ;;  %v1030_v63 = vld [vmem:[%s1492_s9] ss:$0 sm:$0xff] }
 0x1c3   : > { %v626_v1 = vadd.f32 %v1029_v57, %v619_v0  ;;  %v801_v0 = vpop.f32.mrf.mxu0 }
 0x1c5   : > { %v1032_v2 = vpop.eup %1031  ;;  %v956_v4 = vmul.f32 -1.442695, %v626_v1 }
 0x1c6   : > { %v633_v10 = vadd.f32 1.0, %v1032_v2 }
 0x1c7   : > { %1033 = vpow2.f32 %v956_v4 }
 0x1c8   : > { %1035 = vrcp.f32 %v633_v10  ;;  %v646_v20 = vand.u32 2147483648, %v633_v10  ;;  %vm640_vm9 = vweird.f32 %v633_v10  ;;  %v644_v21 = vand.u32 2147483647, %v633_v10 }
 0x1ca   : > { %v647_v27 = vor.u32 1.1754944e-38, %v646_v20  ;;  %vm645_vm12 = vcmp.eq.f32.partialorder %v644_v21, 8.507059e+37 }
 0x1cd   : > { %v1034_v11 = vpop.eup %1033 }
 0x1ce   : > { %v1036_v12 = vpop.eup %1035  ;;  %v634_v13 = vadd.f32 1.0, %v1034_v11 }
 0x1cf   : > { %v636_v14 = vmul.f32 %v1036_v12, %v633_v10  ;;  %vm641_vm8 = vweird.f32 %v1036_v12  ;;  %v804_v10 = vpop.f32.mrf.mxu1 }
 0x1d0   : > { %1037 = vrcp.f32 %v634_v13  ;;  %vm642_vm10 = vmor %vm640_vm9, %vm641_vm8  ;;  %v661_v23 = vand.u32 2147483648, %v634_v13  ;;  %v659_v26 = vand.u32 2147483647, %v634_v13  ;;  %vm655_vm13 = vweird.f32 %v634_v13 }
 0x1d1   : > { %v637_v15 = vsub.f32 1.0, %v636_v14 }
 0x1d2   : > { %v662_v32 = vor.u32 1.1754944e-38, %v661_v23  ;;  %vm660_vm15 = vcmp.eq.f32.partialorder %v659_v26, 8.507059e+37 }
 0x1d3   : > { %v638_v16 = vmul.f32 %v1036_v12, %v637_v15 }
 0x1d5   : > { %v639_v18 = vadd.f32 %v1036_v12, %v638_v16 }
 0x1d6   : > { %v1038_v17 = vpop.eup %1037 }
 0x1d7   : > { %v651_v19 = vmul.f32 %v1038_v17, %v634_v13  ;;  %v643_v24 = vsel %vm642_vm10, %v1036_v12, %v639_v18  ;;  %vm656_vm11 = vweird.f32 %v1038_v17 }
 0x1d8   : > { %v1375_v29 = vsel %vm645_vm12, %v647_v27, %v643_v24  ;;  %vm657_vm14 = vmor %vm655_vm13, %vm656_vm11 }
 0x1d9   : > { %v652_v22 = vsub.f32 1.0, %v651_v19  ;;  %v673_v35 = vmul.f32 %v668_v30, %v1375_v29  ;;  %v815_v11 = vsub.f32 1.0, %v1375_v29 }
 0x1db   : > { %v653_v25 = vmul.f32 %v1038_v17, %v652_v22  ;;  %v817_v16 = vmul.f32 %v815_v11, %v1348_v38 }
 0x1dd   : > { %v654_v28 = vadd.f32 %v1038_v17, %v653_v25 }
 0x1df   : > { %v658_v33 = vsel %vm657_vm14, %v1038_v17, %v654_v28 }
 0x1e0   : > { %v1377_v34 = vsel %vm660_vm15, %v662_v32, %v658_v33 }
 0x1e1   : > { %v674_v36 = vmul.f32 %v670_v31, %v1377_v34  ;;  %v816_v19 = vsub.f32 1.0, %v1377_v34 }
 0x1e3   : > { %v1024_v37 = vpack.i.bf16 %v673_v35, %v674_v36  ;;  %v818_v38 = vmul.f32 %v816_v19, %v1350_v39 }
 0x1e5   : > { %1025 = vrot.lane.b32.xlu1 %v1024_v37, %s1111_s21 }
 0x257   : > { %v1026_v40 = vpop.permute.xlu1 %1025 }
 0x258   : > { %v1027_v41 = vunpack.i.l.bf16 %v1026_v40  ;;  %v1028_v42 = vunpack.i.h.bf16 %v1026_v40 }
 0x25a   : > { %697 = vmatpush.msrb.mxu3 %v1027_v41 }
 0x25c   : > { %698 = vmatpush.msrb.mxu3 %v1028_v42 }
 0x25d   : > { %957 = vmatmul.msk.f32.vlgmr.msrb.gmra.mxu3 %vm410_vm0, %v1231_v3 }
 0x265   : > { %958 = vmatmul.msk.f32.gmra.mxu3 %vm410_vm0, %v1240_v5 }
 0x26d   : > { %959 = vmatmul.msk.f32.gmra.mxu3 %vm410_vm0, %v1249_v6 }
 0x275   : > { %960 = vmatmul.msk.f32.gmra.mxu3 %vm410_vm0, %v1258_v7  ;;  %v751_v7 = vld [vmem:[%s1491_s8 + $0x58] sm:$0xff] }
 0x276   : > { %762 = vmatpush.msrb.mxu2 %v751_v7 }
 0x27d   : > { %961 = vmatmul.msk.f32.gmra.mxu3 %vm410_vm0, %v1267_v8  ;;  %v750_v8 = vld [vmem:[%s1491_s8 + $0x50] sm:$0xff] }
 0x27e   : > { %763 = vmatpush.msrb.mxu2 %v750_v8 }
 0x285   : > { %962 = vmatmul.msk.f32.gmra.mxu3 %vm410_vm0, %v1276_v9  ;;  %v749_v9 = vld [vmem:[%s1491_s8 + $0x48] sm:$0xff] }
 0x286   : > { %764 = vmatpush.msrb.mxu2 %v749_v9 }
 0x288   : > { %765 = vmatpush.msrb.mxu2 %v748_v46 }
 0x28a   : > { %766 = vmatpush.msrb.mxu2 %v747_v47 }
 0x28c   : > { %767 = vmatpush.msrb.mxu2 %v746_v48 }
 0x28e   : > { %768 = vmatpush.msrb.mxu2 %v745_v49 }
 0x290   : > { %769 = vmatpush.msrb.mxu2 %v744_v50 }
 0x292   : > { %770 = vmatpush.msrb.mxu2 %v743_v51 }
 0x294   : > { %771 = vmatpush.msrb.mxu2 %v742_v52 }
 0x296   : > { %772 = vmatpush.msrb.mxu2 %v741_v53 }
 0x298   : > { %773 = vmatpush.msrb.mxu2 %v740_v54 }
 0x2e0   : > { %v700_v43 = vpop.f32.mrf.mxu3 }
 0x2e8   : > { %v703_v44 = vpop.f32.mrf.mxu3 }
 0x2f0   : > { %v706_v45 = vpop.f32.mrf.mxu3 }
 0x2f1   : > { %720 = vrot.lane.b32.xlu2 %v706_v45, %s1501_s20 }
 0x2f8   : > { %v709_v3 = vpop.f32.mrf.mxu3 }
 0x2f9   : > { %722 = vrot.lane.b32.xlu1 %v709_v3, %s1501_s20  ;;  %s976_s20 = sshll.u32 %s1189_s17, 4  ;;  %s826_s17 = scalar_lea.sflag [#allocation3], %s380_s12 }
 0x300   : > { %v712_v5 = vpop.f32.mrf.mxu3 }
 0x301   : > { %728 = vrot.lane.b32.xlu0 %v712_v5, %s1502_s25 }
 0x308   : > { %v715_v6 = vpop.f32.mrf.mxu3 }
 0x309   : > { %730 = vrot.lane.b32.xlu2 %v715_v6, %s1502_s25  ;;  %s837_s25 = scalar_lea.hbm %s1493_s10, %s976_s20 }
 0x30a   : > { %s840_s29 = sshll.u32 %s837_s25, 4  ;;  %s841_s29 = int_to_ptr.hbm [resolvable:$true] %s840_s29 }
 0x30b   : > { %s1057_s30 = sshra.s32 %s841_s29, 4  ;;  %s1058_s30 = int_to_ptr.hbm [resolvable:$true] %s1057_s30 }
 0x30c   : > { %s1059_s11 = scalar_lea.hbm %s1058_s30, 16  ;;  %p1064_p0 = scmp.lt.s32.totalorder %s1058_s30, %s1493_s10 }
 0x30d   : > { %p1060_p11 = scmp.ne.s32.totalorder %s1058_s30, %s1059_s11  ;;  %p1065_p1 = scmp.lt.s32.totalorder %s1063_s27, %s1059_s11 }
 0x30f   : > { %p1061_p12 = pnand %p1060_p11, %p1206_p5  ;;  %p1066_p2 = por %p1065_p1, %p1064_p0 }
 0x311   : > { %p1062_p13 = pneg %p1061_p12 }
 0x313   : > { %p1067_p3 = pnand %p1066_p2, %p1062_p13 }
 0x34b   : > { %v721_v55 = vpop.permute.xlu2 %720 }
 0x34c   : > { %v734_v56 = vsel %vm537_vm6, %v700_v43, %v721_v55 }
 0x363   : > { %v731_v61 = vpop.permute.xlu2 %730 }
 0x36b   : > { %v723_v59 = vpop.permute.xlu1 %722 }
 0x36c   : > { %v735_v60 = vsel %vm537_vm6, %v703_v44, %v723_v59 }
 0x36d   : > { %v737_v62 = vsel %vm540_vm5, %v735_v60, %v731_v61 }
 0x373   : > { %v729_v57 = vpop.permute.xlu0 %728 }
 0x374   : > { %v736_v58 = vsel %vm540_vm5, %v734_v56, %v729_v57 }
 0x375   : > { %963 = vmatmul.msk.f32.vlgmr.msrb.gmra.mxu2 %vm557_vm7, %v736_v58 }
 0x37d   : > { %964 = vmatmul.msk.f32.gmra.mxu2 %vm557_vm7, %v737_v62 }
 0x3f8   : > { %v775_v1 = vpop.f32.mrf.mxu2 }
 0x3f9   : > { %v802_v2 = vadd.f32 %v801_v0, %v775_v1 }
 0x3fb   : > { %v811_v4 = vadd.f32 %v1030_v63, %v802_v2 }
 0x3fd   : > { %1039 = vtanh.f32 %v811_v4 }
 0x400   : > { %v778_v12 = vpop.f32.mrf.mxu2 }
 0x401   : > { %v805_v13 = vadd.f32 %v804_v10, %v778_v12 }
 0x403   : > { %v1040_v14 = vpop.eup %1039  ;;  %v812_v15 = vadd.f32 %v1030_v63, %v805_v13 }
 0x404   : > { %v819_v17 = vmul.f32 %v1040_v14, %v1375_v29 }
 0x405   : > { %1041 = vtanh.f32 %v812_v15 }
 0x406   : > { %v821_v18 = vadd.f32 %v819_v17, %v817_v16 }
 0x408   : > { %823 = vst.msk [vmem:[%s382_s26] sm:$0xff] %vm537_vm6, %v821_v18 }
 0x40b   : > { %v1042_v20 = vpop.eup %1041 }
 0x40c   : > { %v820_v21 = vmul.f32 %v1042_v20, %v1377_v34 }
 0x40e   : > { %v822_v22 = vadd.f32 %v820_v21, %v818_v38 }
 0x410   : > { %824 = vst.msk [vmem:[%s382_s26 + $0x8] sm:$0xff] %vm537_vm6, %v822_v22 }
 0x411   : > { %1070 = shalt.err (!%p1067_p3)
}
 0x412   : > { %s1112_s12 = smov 128   ;;  %s1503_s26 = smov 8  }
 0x413   : > { %979 = dma.vmem_to_hbm [thread:$0]  (%p1206_p5), %s839_s28, 256, %s841_s29, %s826_s17, %s1112_s12, %s1112_s12, %s1503_s26  }
 0x414 PF: > { %p985_p4 = scmp.ge.s32.totalorder %s1105_s16, 2  ;;  %s855_s18 = sand.u32 1, %s1093_s13  }
 0x415   : > { %s856_s20 = scalar_lea.sflag [#allocation3], %s855_s18 }
 0x416   : > { %p982_p7 = pnand %p985_p4, %p1210_p6 }
 0x418   : > { %p983_p8 = pneg %p982_p7 }
 0x41a   : > { %1088 = dma.done.wait (%p983_p8), %s856_s20, 256  }
 0x41b   : > { %1090 = vsyncadd (%p983_p8), %s856_s20, 4294967040  ;;  %p20_p9 = scmp.ge.s32.totalorder %s1193_s19, 4   ;;  %s1504_s13 = smov %s1097_s14 }
 0x41c   : > { %s1505_s14 = smov %s1101_s15  ;;  %s1506_s15 = smov %s1204_s22 }
 0x41d   : > { %s1507_s16 = smov %s1193_s19  ;;  %22 = sbr.rel (!%p20_p9) target bundleno = 3 (0x3), region = 101 }
 0x422   :  { %862 = vsyncpa [#allocation3], 1 }
 0x423   :  { %864 = vsyncpa [#allocation3 + $0x1], 1 }

// kernel: tpu_custom_call.1
= control target key start
LH: loop header
LB: loop body
LE: loop exit
PB: predicated region body
PF: predicated region fallthrough
CT: control target
= control target key end

     0   :  { %15 = vsyncpa [#allocation3], 0  ;;  %s1483_s0 = inlined_call_operand.vmem [shape: f32[48,16], index: 0, kind: input, shape index: {}]   ;;  %s1484_s1 = inlined_call_operand.vmem [shape: f32[2,16,4], index: 1, kind: input, shape index: {}]   ;;  %s1485_s2 = inlined_call_operand.vmem [shape: f32[2,16,32], index: 2, kind: input, shape index: {}]   ;;  %s1486_s3 = inlined_call_operand.vmem [shape: f32[2,16,32], index: 3, kind: input, shape index: {}]   ;;  %s1487_s4 = inlined_call_operand.vmem [shape: f32[12,64], index: 4, kind: input, shape index: {}]   ;;  %s1488_s5 = inlined_call_operand.vmem [shape: f32[96,64], index: 5, kind: input, shape index: {}]   ;;  %s1489_s6 = inlined_call_operand.vmem [shape: f32[1,64], index: 6, kind: input, shape index: {}]   ;;  %s1490_s7 = inlined_call_operand.vmem [shape: f32[12,32], index: 7, kind: input, shape index: {}]   ;;  %s1491_s8 = inlined_call_operand.vmem [shape: f32[96,32], index: 8, kind: input, shape index: {}]   ;;  %s1492_s9 = inlined_call_operand.vmem [shape: f32[1,32], index: 9, kind: input, shape index: {}]   ;;  %s1493_s10 = inlined_call_operand.hbm [shape: f32[2,16,32], index: 10, kind: output, shape index: {}]  }
   0x1   :  { %17 = vsyncpa [#allocation3 + $0x1], 0  ;;  %s1168_s13 = smov 0   ;;  %s1170_s14 = smov 0  }
   0x2   :  { %s1172_s15 = smov 0   ;;  %s1174_s16 = smov 0  }
   0x3 LB: > { %s1189_s17 = sadd.s32 4294967295, %s1105_s16   ;;  %s927_s18 = sadd.s32 4294967294, %s1105_s16   ;;  %s1105_s16 = sphi %s1174_s16, %s1507_s16   ;;  %s1101_s15 = sphi %s1172_s15, %s1506_s15   ;;  %s1097_s14 = sphi %s1170_s14, %s1505_s14   ;;  %s1093_s13 = sphi %s1168_s13, %s1504_s13  }
   0x4   : > { %s1193_s19 = sadd.s32 1, %s1105_s16   ;;  %s255_s20 = sadd.s32 1, %s1101_s15 }
   0x5   : > { %s252_s21 = ssub.s32 %s1105_s16, %s1193_s19  ;;  %p265_p0 = scmp.ne.s32.totalorder %s1101_s15, %s1097_s14 }
   0x6   : > { %p253_p1 = scmp.eq.s32.totalorder %s252_s21, 0  ;;  %p266_p2 = scmp.eq.s32.totalorder %s1189_s17, 1 }
   0x7   : > { %p271_p3 = scmp.ne.s32.totalorder %s1097_s14, %s1093_s13  ;;  %p272_p4 = scmp.eq.s32.totalorder %s927_s18, 1 }
   0x8   : > { %s1204_s22 = scalar_select %p253_p1, %s1101_s15, %s255_s20  }
   0x9   : > { %p1206_p5 = por %p266_p2, %p265_p0  ;;  %p1210_p6 = por %p272_p4, %p271_p3 }
   0xa   : > { %p930_p7 = scmp.ge.s32.totalorder %s1105_s16, 1  ;;  %p335_p8 = scmp.lt.s32.totalorder %s1105_s16, 3 }
   0xc   : > { %p336_p9 = pnand %p930_p7, %p335_p8 }
   0xd   : > { %p383_p10 = scmp.lt.s32.totalorder (!%p336_p9), %s1189_s17, 1  ;;  %s1107_s21 = smov (!%p336_p9), 4  }
   0xe   : > { %339 = sbr.rel (%p336_p9) target bundleno = 1044 (0x414), region = 60  ;;  %s1494_s27 = smov (!%p336_p9), 8  }
   0xf   : > { %s1495_s28 = smov (!%p336_p9), 64   ;;  %s1501_s20 = smov (!%p336_p9), 32  }
  0x13   : > { %s384_s25 = scalar_select %p383_p10, %s1189_s17, 1  ;;  %v1231_v3 = vld [vmem:[%s1483_s0] sm:$0xff]  ;;  %vm410_vm0 = vcmask 130048   ;;  %v1240_v5 = vld [vmem:[%s1483_s0 + $0x8] sm:$0xff]  ;;  %v1249_v6 = vld [vmem:[%s1483_s0 + $0x10] sm:$0xff]  ;;  %vm594_vm1 = vcmask 1043456  }
  0x14   : > { %v1258_v7 = vld [vmem:[%s1483_s0 + $0x18] sm:$0xff]  ;;  %v1267_v8 = vld [vmem:[%s1483_s0 + $0x20] sm:$0xff]  ;;  %v1276_v9 = vld [vmem:[%s1483_s0 + $0x28] sm:$0xff]  ;;  %vm518_vm2 = vcmask 64512   ;;  %vm515_vm3 = vcmask 31744   ;;  %vm587_vm4 = vcmask 97280  }
  0x15   : > { %s1218_s26 = sshll.u32 %s384_s25, 4  ;;  %s1497_s25 = smov 32   ;;  %v556_v22 = vld [vmem:[%s1488_s5 + $0x58] sm:$0xff]  ;;  %v555_v23 = vld [vmem:[%s1488_s5 + $0x50] sm:$0xff]  ;;  %v554_v24 = vld [vmem:[%s1488_s5 + $0x48] sm:$0xff]  ;;  %vm540_vm5 = vcmask 523264  }
  0x16   : > { %s387_s29 = scalar_lea.vmem %s1484_s1, %s1218_s26  ;;  %s392_s12 = scalar_lea.vmem %s1485_s2, %s1218_s26  ;;  %568 = vmatpush.msra.mxu2 %v556_v22  ;;  %v553_v25 = vld [vmem:[%s1488_s5 + $0x40] sm:$0xff]  ;;  %v552_v26 = vld [vmem:[%s1488_s5 + $0x38] sm:$0xff]  ;;  %v551_v27 = vld [vmem:[%s1488_s5 + $0x30] sm:$0xff]  ;;  %vm537_vm6 = vcmask 261120   ;;  %vm557_vm7 = vcmask 785408  }
  0x17   : > { %v405_v0 = vld [vmem:[%s387_s29 + $0x8] sm:$0xff]  ;;  %v404_v1 = vld [vmem:[%s387_s29] sm:$0xff]  ;;  %v548_v34 = vld [vmem:[%s1488_s5 + $0x18] sm:$0xff]  ;;  %s397_s18 = scalar_lea.vmem %s1486_s3, %s1218_s26 }
  0x18   : > { %v407_v2 = vld [vmem:[%s392_s12 + $0x8] sm:$0xff]  ;;  %443 = vmatpush.msra.mxu0 %v405_v0  ;;  %v406_v4 = vld [vmem:[%s392_s12] sm:$0xff]  ;;  %569 = vmatpush.msra.mxu2 %v555_v23  ;;  %v547_v35 = vld [vmem:[%s1488_s5 + $0x10] sm:$0xff]  ;;  %s380_s12 = sand.u32 1, %s1097_s14  }
  0x19   : > { %478 = vmatpush.msra.mxu1 %v407_v2  ;;  %v544_v28 = vld [vmem:[%s1487_s4 + $0x8] sm:$0xf]  ;;  %v549_v31 = vld [vmem:[%s1488_s5 + $0x20] sm:$0xff] }
  0x1a   : > { %444 = vmatpush.msra.mxu0 %v404_v1  ;;  %570 = vmatpush.msra.mxu2 %v554_v24  ;;  %v739_v29 = vld [vmem:[%s1490_s7 + $0x8] sm:$0xf]  ;;  %v543_v32 = vld [vmem:[%s1487_s4] sm:$0xff] }
  0x1b   : > { %479 = vmatpush.msra.mxu1 %v406_v4  ;;  %938 = vmatmul.msk.f32.vlgmr.msra.gmra.mxu0 %vm410_vm0, %v1231_v3  ;;  %v550_v30 = vld [vmem:[%s1488_s5 + $0x28] sm:$0xff]  ;;  %v738_v33 = vld [vmem:[%s1490_s7] sm:$0xff] }
  0x1c   : > { %944 = vmatmul.msk.f32.vlgmr.msra.gmra.mxu1 %vm410_vm0, %v1231_v3  ;;  %571 = vmatpush.msra.mxu2 %v553_v25  ;;  %v546_v36 = vld [vmem:[%s1488_s5 + $0x8] sm:$0xff]  ;;  %v545_v37 = vld [vmem:[%s1488_s5] sm:$0xff] }
  0x1d   : > { %952 = vmatpush.msk.msra.mxu3 %vm594_vm1, %v544_v28  ;;  %965 = vmatpush.msk.msrb.mxu0 %vm594_vm1, %v739_v29  ;;  %v1348_v38 = vld [vmem:[%s397_s18] sm:$0xff]  ;;  %v1350_v39 = vld [vmem:[%s397_s18 + $0x8] sm:$0xff]  ;;  %s931_s18 = sshll.u32 %s380_s12, 4 }
  0x1e   : > { %572 = vmatpush.msra.mxu2 %v552_v26  ;;  %977 = vmatpush.msk.msrb.mxu1 %vm594_vm1, %v739_v29  ;;  %v1029_v57 = vld [vmem:[%s1489_s6] ss:$0 sm:$0xff]  ;;  %s382_s26 = scalar_lea.vmem [#allocation2], %s931_s18 }
  0x1f   : > { %613 = vmatpush.msra.mxu3 %v543_v32  ;;  %799 = vmatpush.msrb.mxu0 %v738_v33 }
  0x20   : > { %573 = vmatpush.msra.mxu2 %v551_v27  ;;  %978 = vmatpush.msrb.mxu1 %v738_v33 }
  0x22   : > { %574 = vmatpush.msra.mxu2 %v550_v30 }
  0x23   : > { %939 = vmatmul.msk.f32.gmra.mxu0 %vm410_vm0, %v1240_v5 }
  0x24   : > { %945 = vmatmul.msk.f32.gmra.mxu1 %vm410_vm0, %v1240_v5  ;;  %575 = vmatpush.msra.mxu2 %v549_v31 }
  0x26   : > { %576 = vmatpush.msra.mxu2 %v548_v34 }
  0x28   : > { %577 = vmatpush.msra.mxu2 %v547_v35 }
  0x2a   : > { %578 = vmatpush.msra.mxu2 %v546_v36 }
  0x2b   : > { %940 = vmatmul.msk.f32.gmra.mxu0 %vm410_vm0, %v1249_v6 }
  0x2c   : > { %946 = vmatmul.msk.f32.gmra.mxu1 %vm410_vm0, %v1249_v6  ;;  %579 = vmatpush.msra.mxu2 %v545_v37 }
  0x33   : > { %941 = vmatmul.msk.f32.gmra.mxu0 %vm410_vm0, %v1258_v7 }
  0x34   : > { %947 = vmatmul.msk.f32.gmra.mxu1 %vm410_vm0, %v1258_v7 }
  0x3b   : > { %942 = vmatmul.msk.f32.gmra.mxu0 %vm410_vm0, %v1267_v8 }
  0x3c   : > { %948 = vmatmul.msk.f32.gmra.mxu1 %vm410_vm0, %v1267_v8 }
  0x43   : > { %943 = vmatmul.msk.f32.gmra.mxu0 %vm410_vm0, %v1276_v9 }
  0x44   : > { %949 = vmatmul.msk.f32.gmra.mxu1 %vm410_vm0, %v1276_v9 }
  0x98   : > { %v1282_v10 = vpop.f32.mrf.mxu0 }
  0x99   : > { %v1284_v11 = vpop.f32.mrf.mxu1 }
  0xa0   : > { %v1286_v12 = vpop.f32.mrf.mxu0 }
  0xa1   : > { %v1288_v13 = vpop.f32.mrf.mxu1 }
  0xa8   : > { %v452_v14 = vpop.f32.mrf.mxu0 }
  0xa9   : > { %v487_v15 = vpop.f32.mrf.mxu1  ;;  %501 = vrot.lane.b32.xlu0 %v452_v14, %s1107_s21 }
  0xb0   : > { %v455_v16 = vpop.f32.mrf.mxu0 }
  0xb1   : > { %523 = vrot.lane.b32.xlu0 %v487_v15, %s1497_s25  ;;  %503 = vrot.lane.b32.xlu2 %v455_v16, %s1107_s21  ;;  %v490_v17 = vpop.f32.mrf.mxu1  ;;  %s1111_s21 = smov 96  }
  0xb8   : > { %v458_v18 = vpop.f32.mrf.mxu0 }
  0xb9   : > { %525 = vrot.lane.b32.xlu2 %v490_v17, %s1497_s25  ;;  %509 = vrot.lane.b32.xlu1 %v458_v18, %s1494_s27  ;;  %v493_v19 = vpop.f32.mrf.mxu1  ;;  %s1502_s25 = smov 64  }
  0xc0   : > { %v461_v20 = vpop.f32.mrf.mxu0 }
  0xc1   : > { %531 = vrot.lane.b32.xlu1 %v493_v19, %s1495_s28  ;;  %511 = vrot.lane.b32.xlu0 %v461_v20, %s1494_s27  ;;  %v496_v21 = vpop.f32.mrf.mxu1  ;;  %s1063_s27 = scalar_lea.hbm %s1493_s10, 32 }
  0xc2   : > { %669 = vrot.lane.b32.xlu2 %v1350_v39, %s1501_s20 }
  0xc9   : > { %533 = vrot.lane.b32.xlu1 %v496_v21, %s1495_s28  ;;  %667 = vrot.lane.b32.xlu0 %v1348_v38, %s1501_s20  ;;  %s838_s28 = sshll.u32 %s382_s26, 4  ;;  %s839_s28 = int_to_ptr.vmem [resolvable:$true] %s838_s28 }
 0x10b   : > { %v504_v45 = vpop.permute.xlu2 %503 }
 0x10c   : > { %v517_v46 = vsel %vm515_vm3, %v1286_v12, %v504_v45 }
 0x113   : > { %v526_v52 = vpop.permute.xlu2 %525 }
 0x114   : > { %v539_v53 = vsel %vm537_vm6, %v1288_v13, %v526_v52  ;;  %v742_v52 = vld [vmem:[%s1491_s8 + $0x10] sm:$0xff] }
 0x11b   : > { %v502_v40 = vpop.permute.xlu0 %501 }
 0x11c   : > { %v516_v41 = vsel %vm515_vm3, %v1282_v10, %v502_v40  ;;  %v670_v31 = vpop.permute.xlu2 %669 }
 0x123   : > { %v524_v42 = vpop.permute.xlu0 %523 }
 0x124   : > { %v538_v47 = vsel %vm537_vm6, %v1284_v11, %v524_v42 }
 0x12b   : > { %v510_v43 = vpop.permute.xlu1 %509 }
 0x12c   : > { %v519_v44 = vsel %vm518_vm2, %v516_v41, %v510_v43 }
 0x12d   : > { %953 = vmatmul.msk.f32.vlgmr.msra.gmra.mxu3 %vm587_vm4, %v519_v44  ;;  %966 = vmatmul.msk.f32.vlgmr.msrb.gmra.mxu0 %vm587_vm4, %v519_v44 }
 0x133   : > { %v532_v48 = vpop.permute.xlu1 %531  ;;  %v512_v49 = vpop.permute.xlu0 %511 }
 0x134   : > { %v541_v50 = vsel %vm540_vm5, %v538_v47, %v532_v48  ;;  %v520_v51 = vsel %vm518_vm2, %v517_v46, %v512_v49  ;;  %v748_v46 = vld [vmem:[%s1491_s8 + $0x40] sm:$0xff]  ;;  %v747_v47 = vld [vmem:[%s1491_s8 + $0x38] sm:$0xff]  ;;  %v746_v48 = vld [vmem:[%s1491_s8 + $0x30] sm:$0xff] }
 0x135   : > { %950 = vmatmul.msk.f32.vlgmr.msra.gmra.mxu2 %vm557_vm7, %v541_v50  ;;  %954 = vmatmul.msk.f32.gmra.mxu3 %vm587_vm4, %v520_v51  ;;  %v745_v49 = vld [vmem:[%s1491_s8 + $0x28] sm:$0xff]  ;;  %v744_v50 = vld [vmem:[%s1491_s8 + $0x20] sm:$0xff] }
 0x136   : > { %967 = vmatmul.msk.f32.vlgmr.msrb.gmra.mxu1 %vm587_vm4, %v520_v51  ;;  %v743_v51 = vld [vmem:[%s1491_s8 + $0x18] sm:$0xff] }
 0x13b   : > { %v534_v54 = vpop.permute.xlu1 %533  ;;  %v668_v30 = vpop.permute.xlu0 %667 }
 0x13c   : > { %v542_v55 = vsel %vm540_vm5, %v539_v53, %v534_v54  ;;  %v741_v53 = vld [vmem:[%s1491_s8 + $0x8] sm:$0xff]  ;;  %v740_v54 = vld [vmem:[%s1491_s8] sm:$0xff] }
 0x13d   : > { %951 = vmatmul.msk.f32.gmra.mxu2 %vm557_vm7, %v542_v55 }
 0x1b0   : > { %v615_v56 = vpop.f32.mrf.mxu3 }
 0x1b8   : > { %v581_v58 = vpop.f32.mrf.mxu2  ;;  %v618_v62 = vpop.f32.mrf.mxu3 }
 0x1b9   : > { %v616_v59 = vadd.f32 %v615_v56, %v581_v58 }
 0x1bb   : > { %v625_v60 = vadd.f32 %v1029_v57, %v616_v59 }
 0x1bd   : > { %v955_v61 = vmul.f32 -1.442695, %v625_v60 }
 0x1bf   : > { %1031 = vpow2.f32 %v955_v61 }
 0x1c0   : > { %v584_v63 = vpop.f32.mrf.mxu2 }
 0x1c1   : > { %v619_v0 = vadd.f32 %v618_v62, %v584_v63  ;;  %v1030_v63 = vld [vmem:[%s1492_s9] ss:$0 sm:$0xff] }
 0x1c3   : > { %v626_v1 = vadd.f32 %v1029_v57, %v619_v0  ;;  %v801_v0 = vpop.f32.mrf.mxu0 }
 0x1c5   : > { %v1032_v2 = vpop.eup %1031  ;;  %v956_v4 = vmul.f32 -1.442695, %v626_v1 }
 0x1c6   : > { %v633_v10 = vadd.f32 1.0, %v1032_v2 }
 0x1c7   : > { %1033 = vpow2.f32 %v956_v4 }
 0x1c8   : > { %1035 = vrcp.f32 %v633_v10  ;;  %v646_v20 = vand.u32 2147483648, %v633_v10  ;;  %vm640_vm9 = vweird.f32 %v633_v10  ;;  %v644_v21 = vand.u32 2147483647, %v633_v10 }
 0x1ca   : > { %v647_v27 = vor.u32 1.1754944e-38, %v646_v20  ;;  %vm645_vm12 = vcmp.eq.f32.partialorder %v644_v21, 8.507059e+37 }
 0x1cd   : > { %v1034_v11 = vpop.eup %1033 }
 0x1ce   : > { %v1036_v12 = vpop.eup %1035  ;;  %v634_v13 = vadd.f32 1.0, %v1034_v11 }
 0x1cf   : > { %v636_v14 = vmul.f32 %v1036_v12, %v633_v10  ;;  %vm641_vm8 = vweird.f32 %v1036_v12  ;;  %v804_v10 = vpop.f32.mrf.mxu1 }
 0x1d0   : > { %1037 = vrcp.f32 %v634_v13  ;;  %vm642_vm10 = vmor %vm640_vm9, %vm641_vm8  ;;  %v661_v23 = vand.u32 2147483648, %v634_v13  ;;  %v659_v26 = vand.u32 2147483647, %v634_v13  ;;  %vm655_vm13 = vweird.f32 %v634_v13 }
 0x1d1   : > { %v637_v15 = vsub.f32 1.0, %v636_v14 }
 0x1d2   : > { %v662_v32 = vor.u32 1.1754944e-38, %v661_v23  ;;  %vm660_vm15 = vcmp.eq.f32.partialorder %v659_v26, 8.507059e+37 }
 0x1d3   : > { %v638_v16 = vmul.f32 %v1036_v12, %v637_v15 }
 0x1d5   : > { %v639_v18 = vadd.f32 %v1036_v12, %v638_v16 }
 0x1d6   : > { %v1038_v17 = vpop.eup %1037 }
 0x1d7   : > { %v651_v19 = vmul.f32 %v1038_v17, %v634_v13  ;;  %v643_v24 = vsel %vm642_vm10, %v1036_v12, %v639_v18  ;;  %vm656_vm11 = vweird.f32 %v1038_v17 }
 0x1d8   : > { %v1375_v29 = vsel %vm645_vm12, %v647_v27, %v643_v24  ;;  %vm657_vm14 = vmor %vm655_vm13, %vm656_vm11 }
 0x1d9   : > { %v652_v22 = vsub.f32 1.0, %v651_v19  ;;  %v673_v35 = vmul.f32 %v668_v30, %v1375_v29  ;;  %v815_v11 = vsub.f32 1.0, %v1375_v29 }
 0x1db   : > { %v653_v25 = vmul.f32 %v1038_v17, %v652_v22  ;;  %v817_v16 = vmul.f32 %v815_v11, %v1348_v38 }
 0x1dd   : > { %v654_v28 = vadd.f32 %v1038_v17, %v653_v25 }
 0x1df   : > { %v658_v33 = vsel %vm657_vm14, %v1038_v17, %v654_v28 }
 0x1e0   : > { %v1377_v34 = vsel %vm660_vm15, %v662_v32, %v658_v33 }
 0x1e1   : > { %v674_v36 = vmul.f32 %v670_v31, %v1377_v34  ;;  %v816_v19 = vsub.f32 1.0, %v1377_v34 }
 0x1e3   : > { %v1024_v37 = vpack.i.bf16 %v673_v35, %v674_v36  ;;  %v818_v38 = vmul.f32 %v816_v19, %v1350_v39 }
 0x1e5   : > { %1025 = vrot.lane.b32.xlu1 %v1024_v37, %s1111_s21 }
 0x257   : > { %v1026_v40 = vpop.permute.xlu1 %1025 }
 0x258   : > { %v1027_v41 = vunpack.i.l.bf16 %v1026_v40  ;;  %v1028_v42 = vunpack.i.h.bf16 %v1026_v40 }
 0x25a   : > { %697 = vmatpush.msrb.mxu3 %v1027_v41 }
 0x25c   : > { %698 = vmatpush.msrb.mxu3 %v1028_v42 }
 0x25d   : > { %957 = vmatmul.msk.f32.vlgmr.msrb.gmra.mxu3 %vm410_vm0, %v1231_v3 }
 0x265   : > { %958 = vmatmul.msk.f32.gmra.mxu3 %vm410_vm0, %v1240_v5 }
 0x26d   : > { %959 = vmatmul.msk.f32.gmra.mxu3 %vm410_vm0, %v1249_v6 }
 0x275   : > { %960 = vmatmul.msk.f32.gmra.mxu3 %vm410_vm0, %v1258_v7  ;;  %v751_v7 = vld [vmem:[%s1491_s8 + $0x58] sm:$0xff] }
 0x276   : > { %762 = vmatpush.msrb.mxu2 %v751_v7 }
 0x27d   : > { %961 = vmatmul.msk.f32.gmra.mxu3 %vm410_vm0, %v1267_v8  ;;  %v750_v8 = vld [vmem:[%s1491_s8 + $0x50] sm:$0xff] }
 0x27e   : > { %763 = vmatpush.msrb.mxu2 %v750_v8 }
 0x285   : > { %962 = vmatmul.msk.f32.gmra.mxu3 %vm410_vm0, %v1276_v9  ;;  %v749_v9 = vld [vmem:[%s1491_s8 + $0x48] sm:$0xff] }
 0x286   : > { %764 = vmatpush.msrb.mxu2 %v749_v9 }
 0x288   : > { %765 = vmatpush.msrb.mxu2 %v748_v46 }
 0x28a   : > { %766 = vmatpush.msrb.mxu2 %v747_v47 }
 0x28c   : > { %767 = vmatpush.msrb.mxu2 %v746_v48 }
 0x28e   : > { %768 = vmatpush.msrb.mxu2 %v745_v49 }
 0x290   : > { %769 = vmatpush.msrb.mxu2 %v744_v50 }
 0x292   : > { %770 = vmatpush.msrb.mxu2 %v743_v51 }
 0x294   : > { %771 = vmatpush.msrb.mxu2 %v742_v52 }
 0x296   : > { %772 = vmatpush.msrb.mxu2 %v741_v53 }
 0x298   : > { %773 = vmatpush.msrb.mxu2 %v740_v54 }
 0x2e0   : > { %v700_v43 = vpop.f32.mrf.mxu3 }
 0x2e8   : > { %v703_v44 = vpop.f32.mrf.mxu3 }
 0x2f0   : > { %v706_v45 = vpop.f32.mrf.mxu3 }
 0x2f1   : > { %720 = vrot.lane.b32.xlu2 %v706_v45, %s1501_s20 }
 0x2f8   : > { %v709_v3 = vpop.f32.mrf.mxu3 }
 0x2f9   : > { %722 = vrot.lane.b32.xlu1 %v709_v3, %s1501_s20  ;;  %s976_s20 = sshll.u32 %s1189_s17, 4  ;;  %s826_s17 = scalar_lea.sflag [#allocation3], %s380_s12 }
 0x300   : > { %v712_v5 = vpop.f32.mrf.mxu3 }
 0x301   : > { %728 = vrot.lane.b32.xlu0 %v712_v5, %s1502_s25 }
 0x308   : > { %v715_v6 = vpop.f32.mrf.mxu3 }
 0x309   : > { %730 = vrot.lane.b32.xlu2 %v715_v6, %s1502_s25  ;;  %s837_s25 = scalar_lea.hbm %s1493_s10, %s976_s20 }
 0x30a   : > { %s840_s29 = sshll.u32 %s837_s25, 4  ;;  %s841_s29 = int_to_ptr.hbm [resolvable:$true] %s840_s29 }
 0x30b   : > { %s1057_s30 = sshra.s32 %s841_s29, 4  ;;  %s1058_s30 = int_to_ptr.hbm [resolvable:$true] %s1057_s30 }
 0x30c   : > { %s1059_s11 = scalar_lea.hbm %s1058_s30, 16  ;;  %p1064_p0 = scmp.lt.s32.totalorder %s1058_s30, %s1493_s10 }
 0x30d   : > { %p1060_p11 = scmp.ne.s32.totalorder %s1058_s30, %s1059_s11  ;;  %p1065_p1 = scmp.lt.s32.totalorder %s1063_s27, %s1059_s11 }
 0x30f   : > { %p1061_p12 = pnand %p1060_p11, %p1206_p5  ;;  %p1066_p2 = por %p1065_p1, %p1064_p0 }
 0x311   : > { %p1062_p13 = pneg %p1061_p12 }
 0x313   : > { %p1067_p3 = pnand %p1066_p2, %p1062_p13 }
 0x34b   : > { %v721_v55 = vpop.permute.xlu2 %720 }
 0x34c   : > { %v734_v56 = vsel %vm537_vm6, %v700_v43, %v721_v55 }
 0x363   : > { %v731_v61 = vpop.permute.xlu2 %730 }
 0x36b   : > { %v723_v59 = vpop.permute.xlu1 %722 }
 0x36c   : > { %v735_v60 = vsel %vm537_vm6, %v703_v44, %v723_v59 }
 0x36d   : > { %v737_v62 = vsel %vm540_vm5, %v735_v60, %v731_v61 }
 0x373   : > { %v729_v57 = vpop.permute.xlu0 %728 }
 0x374   : > { %v736_v58 = vsel %vm540_vm5, %v734_v56, %v729_v57 }
 0x375   : > { %963 = vmatmul.msk.f32.vlgmr.msrb.gmra.mxu2 %vm557_vm7, %v736_v58 }
 0x37d   : > { %964 = vmatmul.msk.f32.gmra.mxu2 %vm557_vm7, %v737_v62 }
 0x3f8   : > { %v775_v1 = vpop.f32.mrf.mxu2 }
 0x3f9   : > { %v802_v2 = vadd.f32 %v801_v0, %v775_v1 }
 0x3fb   : > { %v811_v4 = vadd.f32 %v1030_v63, %v802_v2 }
 0x3fd   : > { %1039 = vtanh.f32 %v811_v4 }
 0x400   : > { %v778_v12 = vpop.f32.mrf.mxu2 }
 0x401   : > { %v805_v13 = vadd.f32 %v804_v10, %v778_v12 }
 0x403   : > { %v1040_v14 = vpop.eup %1039  ;;  %v812_v15 = vadd.f32 %v1030_v63, %v805_v13 }
 0x404   : > { %v819_v17 = vmul.f32 %v1040_v14, %v1375_v29 }
 0x405   : > { %1041 = vtanh.f32 %v812_v15 }
 0x406   : > { %v821_v18 = vadd.f32 %v819_v17, %v817_v16 }
 0x408   : > { %823 = vst.msk [vmem:[%s382_s26] sm:$0xff] %vm537_vm6, %v821_v18 }
 0x40b   : > { %v1042_v20 = vpop.eup %1041 }
 0x40c   : > { %v820_v21 = vmul.f32 %v1042_v20, %v1377_v34 }
 0x40e   : > { %v822_v22 = vadd.f32 %v820_v21, %v818_v38 }
 0x410   : > { %824 = vst.msk [vmem:[%s382_s26 + $0x8] sm:$0xff] %vm537_vm6, %v822_v22 }
 0x411   : > { %1070 = shalt.err (!%p1067_p3)
}
 0x412   : > { %s1112_s12 = smov 128   ;;  %s1503_s26 = smov 8  }
 0x413   : > { %979 = dma.vmem_to_hbm [thread:$0]  (%p1206_p5), %s839_s28, 256, %s841_s29, %s826_s17, %s1112_s12, %s1112_s12, %s1503_s26  }
 0x414 PF: > { %p985_p4 = scmp.ge.s32.totalorder %s1105_s16, 2  ;;  %s855_s18 = sand.u32 1, %s1093_s13  }
 0x415   : > { %s856_s20 = scalar_lea.sflag [#allocation3], %s855_s18 }
 0x416   : > { %p982_p7 = pnand %p985_p4, %p1210_p6 }
 0x418   : > { %p983_p8 = pneg %p982_p7 }
 0x41a   : > { %1088 = dma.done.wait (%p983_p8), %s856_s20, 256  }
 0x41b   : > { %1090 = vsyncadd (%p983_p8), %s856_s20, 4294967040  ;;  %p20_p9 = scmp.ge.s32.totalorder %s1193_s19, 4   ;;  %s1504_s13 = smov %s1097_s14 }
 0x41c   : > { %s1505_s14 = smov %s1101_s15  ;;  %s1506_s15 = smov %s1204_s22 }
 0x41d   : > { %s1507_s16 = smov %s1193_s19  ;;  %22 = sbr.rel (!%p20_p9) target bundleno = 3 (0x3), region = 101 }
 0x422   :  { %862 = vsyncpa [#allocation3], 1 }
 0x423   :  { %864 = vsyncpa [#allocation3 + $0x1], 1 }

</bundles_post_ra>
